<compile_context>
chip_gen: v7x
topology: tpu7x:2x2x1
jax: 0.10.0
libtpu: 0.0.40
codegen_flags: <defaults>
</compile_context>

<pallas_src>
import jax
import jax.numpy as jnp
from jax.experimental import pallas as pl
from jax.experimental.pallas import tpu as pltpu


def _softplus(x):
    # Matches F.softplus default (beta=1, threshold=20).
    return jnp.where(x > 20.0, x, jnp.log1p(jnp.exp(jnp.minimum(x, 20.0))))


def _mm(a, w_ref):
    # bf16 x bf16 MXU matmul with f32 accumulation (weights already bf16 in VMEM).
    return jnp.dot(a.astype(jnp.bfloat16), w_ref[...],
                   preferred_element_type=jnp.float32)


def cnf_vae_kernel(
    x_ref, eps_ref,
    e1w, e1b, e2w, e2b, e3w, e3b,      # encoder (third layer = fused mu/std projection)
    o1w, o1b, o2w, o2b, o3w, o3b,      # ODEFunc net
    d1w, d1b, d2w, d2b, d3w, d3b,      # decoder
    out_ref,                           # packed (TB, 3*D): [x_recon | mu | std]
):
    D = x_ref.shape[-1]
    x = x_ref[...]

    # ---------------- encoder ----------------
    h = jnp.maximum(_mm(x, e1w) + e1b[...], 0.0)
    h = jnp.maximum(_mm(h, e2w) + e2b[...], 0.0)
    y = _mm(h, e3w) + e3b[...]                     # (TB, 2*D) fused mu/std projection
    mu = y[:, :D]                                  # == h.chunk(2, dim=1)[0]
    std = _softplus(y[:, D:]) + 1e-6               # == softplus(chunk[1]) + 1e-6

    # ------------- reparameterization -------------
    z0 = mu + std * eps_ref[...]

    # ------------- CNF flow: one fixed-grid RK4 step, t: 0 -> 1 (dt = 1) -------------
    # torchdiffeq's 'rk4' fixed-grid solver uses the 3/8-rule step (rk4_alt_step_func);
    # the ODE function is time-independent so t never enters the computation.
    def f(z):
        a = jnp.tanh(_mm(z, o1w) + o1b[...])
        a = jnp.tanh(_mm(a, o2w) + o2b[...])
        return _mm(a, o3w) + o3b[...]

    dt = 1.0
    third = 1.0 / 3.0
    k1 = f(z0)
    k2 = f(z0 + dt * k1 * third)
    k3 = f(z0 + dt * (k2 - k1 * third))
    k4 = f(z0 + dt * (k1 - k2 + k3))
    zk = z0 + dt * (k1 + 3.0 * (k2 + k3) + k4) * 0.125

    # ---------------- decoder ----------------
    g = jnp.maximum(_mm(zk, d1w) + d1b[...], 0.0)
    g = jnp.maximum(_mm(g, d2w) + d2b[...], 0.0)
    xr = _mm(g, d3w) + d3b[...]

    # Single lane-dense packed store instead of three 16-lane masked stores.
    out_ref[...] = jnp.concatenate([xr, mu, std], axis=-1)


def cnf_vae_forward(x, eps, params, *, tb=8):
    """Full CNFVAE.forward. x, eps: (B, D) f32. Returns (x_recon, mu, std) f32."""
    B, D = x.shape

    # Flatten (w, b) pairs; weights -> bf16 (HBM traffic / MXU), biases stay f32.
    flat = []
    for w, b in params:
        flat.append(w.astype(jnp.bfloat16))
        flat.append(b.astype(jnp.float32))

    # Pad batch up to a multiple of the batch tile (TB multiple of 8 for f32 sublanes).
    TB = tb
    Bp = ((B + TB - 1) // TB) * TB
    if Bp != B:
        pad = Bp - B
        x = jnp.pad(x, ((0, pad), (0, 0)))
        eps = jnp.pad(eps, ((0, pad), (0, 0)))

    grid = (Bp // TB,)

    act_spec = pl.BlockSpec((TB, D), lambda i: (i, 0))
    out_spec = pl.BlockSpec((TB, 3 * D), lambda i: (i, 0))

    def resident(a):
        # Full array resident in VMEM, same block for every grid step.
        n = a.ndim
        return pl.BlockSpec(a.shape, lambda i: (0,) * n)

    w_specs = [resident(a) for a in flat]

    # Advisory cost estimate (kernel is latency/launch-bound at these sizes).
    H, OH = 512, 128
    macs = ((D * H + H * H + H * 2 * D)                 # encoder
            + 4 * (D * OH + OH * OH + OH * D)           # 4 ODEFunc evals
            + (D * H + H * H + H * D))                  # decoder
    weight_bytes = sum(int(a.size) * a.dtype.itemsize for a in flat)
    cost = pl.CostEstimate(
        flops=2 * Bp * macs,
        transcendentals=Bp * (4 * 2 * OH + 2 * D),
        bytes_accessed=weight_bytes + Bp * D * 4 * 2 + Bp * 3 * D * 4,
    )

    packed = pl.pallas_call(
        cnf_vae_kernel,
        out_shape=jax.ShapeDtypeStruct((Bp, 3 * D), jnp.float32),
        grid=grid,
        in_specs=[act_spec, act_spec] + w_specs,
        out_specs=out_spec,
        compiler_params=pltpu.CompilerParams(
            dimension_semantics=("parallel",)),
        cost_estimate=cost,
    )(x, eps, *flat)

    packed = packed[:B]
    return packed[:, :D], packed[:, D:2 * D], packed[:, 2 * D:]


def init_params(key, D):
    """Deterministic synthetic parameters with the shapes implied by CNFVAE.__init__.

    Weights are (in, out) (i.e. PyTorch (out, in) pre-transposed); biases are (1, out).
    The encoder's third layer is kept FUSED as (512, 2*D) weight + (1, 2*D) bias; when
    loading real PyTorch weights, pass that layer's weight.T and bias un-chunked — the
    kernel does the mu/std chunking itself.
    """
    H = 512    # encoder / decoder hidden
    OH = 128   # ODEFunc hidden
    ks = iter(jax.random.split(key, 9))

    def w(k, fan_in, fan_out, std):
        return jax.random.normal(k, (fan_in, fan_out), jnp.float32) * std

    def b(fan_out):
        return jnp.zeros((1, fan_out), jnp.float32)

    return (
        # encoder: Linear(D,512) -> ReLU -> Linear(512,512) -> ReLU -> Linear(512, 2D)
        (w(next(ks), D, H, 0.02), b(H)),
        (w(next(ks), H, H, 0.02), b(H)),
        (w(next(ks), H, 2 * D, 0.02), b(2 * D)),
        # ODEFunc: Linear(D,128) -> Tanh -> Linear(128,128) -> Tanh -> Linear(128,D)
        # (module init: normal(std=0.01) weights, zero bias)
        (w(next(ks), D, OH, 0.01), b(OH)),
        (w(next(ks), OH, OH, 0.01), b(OH)),
        (w(next(ks), OH, D, 0.01), b(D)),
        # decoder: Linear(D,512) -> ReLU -> Linear(512,512) -> ReLU -> Linear(512,D)
        (w(next(ks), D, H, 0.02), b(H)),
        (w(next(ks), H, H, 0.02), b(H)),
        (w(next(ks), H, D, 0.02), b(D)),
    )


def ref_forward(x, eps, params):
    """Pure-JAX f32 reference (same math, no bf16) for a correctness check."""
    (e1, e2, e3, o1, o2, o3, d1, d2, d3) = params
    D = x.shape[-1]

    def lin(a, wb):
        return a @ wb[0] + wb[1]

    h = jax.nn.relu(lin(x, e1))
    h = jax.nn.relu(lin(h, e2))
    y = lin(h, e3)
    mu = y[:, :D]
    std = jax.nn.softplus(y[:, D:]) + 1e-6
    z0 = mu + std * eps

    def f(z):
        a = jnp.tanh(lin(z, o1))
        a = jnp.tanh(lin(a, o2))
        return lin(a, o3)

    k1 = f(z0)
    k2 = f(z0 + k1 / 3.0)
    k3 = f(z0 + (k2 - k1 / 3.0))
    k4 = f(z0 + (k1 - k2 + k3))
    zk = z0 + (k1 + 3.0 * (k2 + k3) + k4) * 0.125

    g = jax.nn.relu(lin(zk, d1))
    g = jax.nn.relu(lin(g, d2))
    return lin(g, d3), mu, std


if __name__ == "__main__":
    key = jax.random.PRNGKey(0)
    B, D = 32, 16
    k_x, k_eps, k_p = jax.random.split(key, 3)

    x = jax.random.normal(k_x, (B, D), jnp.float32)
    # eps == torch.randn_like(mu); generated outside the kernel for determinism.
    eps = jax.random.normal(k_eps, (B, D), jnp.float32)
    params = init_params(k_p, D)

    x_recon, mu, std = cnf_vae_forward(x, eps, params, tb=8)
    jax.block_until_ready((x_recon, mu, std))

    assert x_recon.shape == (B, D) and mu.shape == (B, D) and std.shape == (B, D)
    assert bool(jnp.all(std > 0.0))

    xr_ref, mu_ref, std_ref = ref_forward(x, eps, params)
    for got, want in ((x_recon, xr_ref), (mu, mu_ref), (std, std_ref)):
        assert bool(jnp.max(jnp.abs(got - want)) < 2e-2), "mismatch vs f32 reference"

    print("KERNEL_OK")
</pallas_src>

<mosaic_0001>
module attributes {stable_mosaic.version = 11 : i64} {
  func.func @cnf_vae_kernel(%arg0: i32, %arg1: memref<8x16xf32, #tpu.memory_space<vmem>>, %arg2: memref<8x16xf32, #tpu.memory_space<vmem>>, %arg3: memref<16x512xbf16, #tpu.memory_space<vmem>>, %arg4: memref<1x512xf32, #tpu.memory_space<vmem>>, %arg5: memref<512x512xbf16, #tpu.memory_space<vmem>>, %arg6: memref<1x512xf32, #tpu.memory_space<vmem>>, %arg7: memref<512x32xbf16, #tpu.memory_space<vmem>>, %arg8: memref<1x32xf32, #tpu.memory_space<vmem>>, %arg9: memref<16x128xbf16, #tpu.memory_space<vmem>>, %arg10: memref<1x128xf32, #tpu.memory_space<vmem>>, %arg11: memref<128x128xbf16, #tpu.memory_space<vmem>>, %arg12: memref<1x128xf32, #tpu.memory_space<vmem>>, %arg13: memref<128x16xbf16, #tpu.memory_space<vmem>>, %arg14: memref<1x16xf32, #tpu.memory_space<vmem>>, %arg15: memref<16x512xbf16, #tpu.memory_space<vmem>>, %arg16: memref<1x512xf32, #tpu.memory_space<vmem>>, %arg17: memref<512x512xbf16, #tpu.memory_space<vmem>>, %arg18: memref<1x512xf32, #tpu.memory_space<vmem>>, %arg19: memref<512x16xbf16, #tpu.memory_space<vmem>>, %arg20: memref<1x16xf32, #tpu.memory_space<vmem>>, %arg21: memref<8x48xf32, #tpu.memory_space<vmem>>) attributes {dimension_semantics = [#tpu.dimension_semantics<parallel>], iteration_bounds = array<i64: 4>, scalar_prefetch = 0 : i64, scratch_operands = 0 : i64, tpu.core_type = #tpu.core_type<tc>, window_params = [{transform_indices = @transform_0, window_bounds = array<i64: 8, 16>}, {transform_indices = @transform_1, window_bounds = array<i64: 8, 16>}, {pipeline_mode = #tpu.pipeline_mode<synchronous>, transform_indices = @transform_2, window_bounds = array<i64: 16, 512>}, {pipeline_mode = #tpu.pipeline_mode<synchronous>, transform_indices = @transform_3, window_bounds = array<i64: 1, 512>}, {pipeline_mode = #tpu.pipeline_mode<synchronous>, transform_indices = @transform_4, window_bounds = array<i64: 512, 512>}, {pipeline_mode = #tpu.pipeline_mode<synchronous>, transform_indices = @transform_5, window_bounds = array<i64: 1, 512>}, {pipeline_mode = #tpu.pipeline_mode<synchronous>, transform_indices = @transform_6, window_bounds = array<i64: 512, 32>}, {pipeline_mode = #tpu.pipeline_mode<synchronous>, transform_indices = @transform_7, window_bounds = array<i64: 1, 32>}, {pipeline_mode = #tpu.pipeline_mode<synchronous>, transform_indices = @transform_8, window_bounds = array<i64: 16, 128>}, {pipeline_mode = #tpu.pipeline_mode<synchronous>, transform_indices = @transform_9, window_bounds = array<i64: 1, 128>}, {pipeline_mode = #tpu.pipeline_mode<synchronous>, transform_indices = @transform_10, window_bounds = array<i64: 128, 128>}, {pipeline_mode = #tpu.pipeline_mode<synchronous>, transform_indices = @transform_11, window_bounds = array<i64: 1, 128>}, {pipeline_mode = #tpu.pipeline_mode<synchronous>, transform_indices = @transform_12, window_bounds = array<i64: 128, 16>}, {pipeline_mode = #tpu.pipeline_mode<synchronous>, transform_indices = @transform_13, window_bounds = array<i64: 1, 16>}, {pipeline_mode = #tpu.pipeline_mode<synchronous>, transform_indices = @transform_14, window_bounds = array<i64: 16, 512>}, {pipeline_mode = #tpu.pipeline_mode<synchronous>, transform_indices = @transform_15, window_bounds = array<i64: 1, 512>}, {pipeline_mode = #tpu.pipeline_mode<synchronous>, transform_indices = @transform_16, window_bounds = array<i64: 512, 512>}, {pipeline_mode = #tpu.pipeline_mode<synchronous>, transform_indices = @transform_17, window_bounds = array<i64: 1, 512>}, {pipeline_mode = #tpu.pipeline_mode<synchronous>, transform_indices = @transform_18, window_bounds = array<i64: 512, 16>}, {pipeline_mode = #tpu.pipeline_mode<synchronous>, transform_indices = @transform_19, window_bounds = array<i64: 1, 16>}, {transform_indices = @transform_20, window_bounds = array<i64: 8, 48>}]} {
    %c0 = arith.constant 0 : index
    %c0_0 = arith.constant 0 : index
    %0 = vector.load %arg1[%c0, %c0_0] : memref<8x16xf32, #tpu.memory_space<vmem>>, vector<8x16xf32>
    %1 = arith.truncf %0 : vector<8x16xf32> to vector<8x16xbf16>
    %c0_1 = arith.constant 0 : index
    %c0_2 = arith.constant 0 : index
    %2 = vector.load %arg3[%c0_1, %c0_2] : memref<16x512xbf16, #tpu.memory_space<vmem>>, vector<16x512xbf16>
    %cst = arith.constant dense<0.000000e+00> : vector<8x512xf32>
    %3 = tpu.matmul %1, %2, %cst {dimension_numbers = #tpu.dot_dimension_numbers<[1], [0], [0], [1], [0, 0, 1, 1], [], []>} : vector<8x16xbf16>, vector<16x512xbf16>, vector<8x512xf32> -> vector<8x512xf32>
    %c0_3 = arith.constant 0 : index
    %c0_4 = arith.constant 0 : index
    %4 = vector.load %arg4[%c0_3, %c0_4] : memref<1x512xf32, #tpu.memory_space<vmem>>, vector<1x512xf32>
    %5 = vector.broadcast %4 : vector<1x512xf32> to vector<8x512xf32>
    %6 = arith.addf %3, %5 : vector<8x512xf32>
    %cst_5 = arith.constant 0.000000e+00 : f32
    %7 = vector.broadcast %cst_5 : f32 to vector<8x512xf32>
    %8 = arith.maximumf %6, %7 : vector<8x512xf32>
    %9 = arith.truncf %8 : vector<8x512xf32> to vector<8x512xbf16>
    %c0_6 = arith.constant 0 : index
    %c0_7 = arith.constant 0 : index
    %10 = vector.load %arg5[%c0_6, %c0_7] : memref<512x512xbf16, #tpu.memory_space<vmem>>, vector<512x512xbf16>
    %cst_8 = arith.constant dense<0.000000e+00> : vector<8x512xf32>
    %11 = tpu.matmul %9, %10, %cst_8 {dimension_numbers = #tpu.dot_dimension_numbers<[1], [0], [0], [1], [0, 0, 1, 1], [], []>} : vector<8x512xbf16>, vector<512x512xbf16>, vector<8x512xf32> -> vector<8x512xf32>
    %c0_9 = arith.constant 0 : index
    %c0_10 = arith.constant 0 : index
    %12 = vector.load %arg6[%c0_9, %c0_10] : memref<1x512xf32, #tpu.memory_space<vmem>>, vector<1x512xf32>
    %13 = vector.broadcast %12 : vector<1x512xf32> to vector<8x512xf32>
    %14 = arith.addf %11, %13 : vector<8x512xf32>
    %cst_11 = arith.constant 0.000000e+00 : f32
    %15 = vector.broadcast %cst_11 : f32 to vector<8x512xf32>
    %16 = arith.maximumf %14, %15 : vector<8x512xf32>
    %17 = arith.truncf %16 : vector<8x512xf32> to vector<8x512xbf16>
    %c0_12 = arith.constant 0 : index
    %c0_13 = arith.constant 0 : index
    %18 = vector.load %arg7[%c0_12, %c0_13] : memref<512x32xbf16, #tpu.memory_space<vmem>>, vector<512x32xbf16>
    %cst_14 = arith.constant dense<0.000000e+00> : vector<8x32xf32>
    %19 = tpu.matmul %17, %18, %cst_14 {dimension_numbers = #tpu.dot_dimension_numbers<[1], [0], [0], [1], [0, 0, 1, 1], [], []>} : vector<8x512xbf16>, vector<512x32xbf16>, vector<8x32xf32> -> vector<8x32xf32>
    %c0_15 = arith.constant 0 : index
    %c0_16 = arith.constant 0 : index
    %20 = vector.load %arg8[%c0_15, %c0_16] : memref<1x32xf32, #tpu.memory_space<vmem>>, vector<1x32xf32>
    %21 = vector.broadcast %20 : vector<1x32xf32> to vector<8x32xf32>
    %22 = arith.addf %19, %21 : vector<8x32xf32>
    %23 = vector.extract_strided_slice %22 {offsets = [0, 0], sizes = [8, 16], strides = [1, 1]} : vector<8x32xf32> to vector<8x16xf32>
    %24 = vector.extract_strided_slice %22 {offsets = [0, 16], sizes = [8, 16], strides = [1, 1]} : vector<8x32xf32> to vector<8x16xf32>
    %cst_17 = arith.constant 2.000000e+01 : f32
    %25 = vector.broadcast %cst_17 : f32 to vector<8x16xf32>
    %26 = arith.cmpf ogt, %24, %25 : vector<8x16xf32>
    %cst_18 = arith.constant 2.000000e+01 : f32
    %27 = vector.broadcast %cst_18 : f32 to vector<8x16xf32>
    %28 = arith.minimumf %24, %27 : vector<8x16xf32>
    %29 = math.exp %28 : vector<8x16xf32>
    %30 = math.log1p %29 : vector<8x16xf32>
    %31 = arith.select %26, %24, %30 : vector<8x16xi1>, vector<8x16xf32>
    %cst_19 = arith.constant 9.99999997E-7 : f32
    %32 = vector.broadcast %cst_19 : f32 to vector<8x16xf32>
    %33 = arith.addf %31, %32 : vector<8x16xf32>
    %c0_20 = arith.constant 0 : index
    %c0_21 = arith.constant 0 : index
    %34 = vector.load %arg2[%c0_20, %c0_21] : memref<8x16xf32, #tpu.memory_space<vmem>>, vector<8x16xf32>
    %35 = arith.mulf %33, %34 : vector<8x16xf32>
    %36 = arith.addf %23, %35 : vector<8x16xf32>
    %37 = arith.truncf %36 : vector<8x16xf32> to vector<8x16xbf16>
    %c0_22 = arith.constant 0 : index
    %c0_23 = arith.constant 0 : index
    %38 = vector.load %arg9[%c0_22, %c0_23] : memref<16x128xbf16, #tpu.memory_space<vmem>>, vector<16x128xbf16>
    %cst_24 = arith.constant dense<0.000000e+00> : vector<8x128xf32>
    %39 = tpu.matmul %37, %38, %cst_24 {dimension_numbers = #tpu.dot_dimension_numbers<[1], [0], [0], [1], [0, 0, 1, 1], [], []>} : vector<8x16xbf16>, vector<16x128xbf16>, vector<8x128xf32> -> vector<8x128xf32>
    %c0_25 = arith.constant 0 : index
    %c0_26 = arith.constant 0 : index
    %40 = vector.load %arg10[%c0_25, %c0_26] : memref<1x128xf32, #tpu.memory_space<vmem>>, vector<1x128xf32>
    %41 = vector.broadcast %40 : vector<1x128xf32> to vector<8x128xf32>
    %42 = arith.addf %39, %41 : vector<8x128xf32>
    %43 = math.tanh %42 : vector<8x128xf32>
    %44 = arith.truncf %43 : vector<8x128xf32> to vector<8x128xbf16>
    %c0_27 = arith.constant 0 : index
    %c0_28 = arith.constant 0 : index
    %45 = vector.load %arg11[%c0_27, %c0_28] : memref<128x128xbf16, #tpu.memory_space<vmem>>, vector<128x128xbf16>
    %cst_29 = arith.constant dense<0.000000e+00> : vector<8x128xf32>
    %46 = tpu.matmul %44, %45, %cst_29 {dimension_numbers = #tpu.dot_dimension_numbers<[1], [0], [0], [1], [0, 0, 1, 1], [], []>} : vector<8x128xbf16>, vector<128x128xbf16>, vector<8x128xf32> -> vector<8x128xf32>
    %c0_30 = arith.constant 0 : index
    %c0_31 = arith.constant 0 : index
    %47 = vector.load %arg12[%c0_30, %c0_31] : memref<1x128xf32, #tpu.memory_space<vmem>>, vector<1x128xf32>
    %48 = vector.broadcast %47 : vector<1x128xf32> to vector<8x128xf32>
    %49 = arith.addf %46, %48 : vector<8x128xf32>
    %50 = math.tanh %49 : vector<8x128xf32>
    %51 = arith.truncf %50 : vector<8x128xf32> to vector<8x128xbf16>
    %c0_32 = arith.constant 0 : index
    %c0_33 = arith.constant 0 : index
    %52 = vector.load %arg13[%c0_32, %c0_33] : memref<128x16xbf16, #tpu.memory_space<vmem>>, vector<128x16xbf16>
    %cst_34 = arith.constant dense<0.000000e+00> : vector<8x16xf32>
    %53 = tpu.matmul %51, %52, %cst_34 {dimension_numbers = #tpu.dot_dimension_numbers<[1], [0], [0], [1], [0, 0, 1, 1], [], []>} : vector<8x128xbf16>, vector<128x16xbf16>, vector<8x16xf32> -> vector<8x16xf32>
    %c0_35 = arith.constant 0 : index
    %c0_36 = arith.constant 0 : index
    %54 = vector.load %arg14[%c0_35, %c0_36] : memref<1x16xf32, #tpu.memory_space<vmem>>, vector<1x16xf32>
    %55 = vector.broadcast %54 : vector<1x16xf32> to vector<8x16xf32>
    %56 = arith.addf %53, %55 : vector<8x16xf32>
    %cst_37 = arith.constant 1.000000e+00 : f32
    %57 = vector.broadcast %cst_37 : f32 to vector<8x16xf32>
    %58 = arith.mulf %57, %56 : vector<8x16xf32>
    %cst_38 = arith.constant 0.333333343 : f32
    %59 = vector.broadcast %cst_38 : f32 to vector<8x16xf32>
    %60 = arith.mulf %58, %59 : vector<8x16xf32>
    %61 = arith.addf %36, %60 : vector<8x16xf32>
    %62 = arith.truncf %61 : vector<8x16xf32> to vector<8x16xbf16>
    %c0_39 = arith.constant 0 : index
    %c0_40 = arith.constant 0 : index
    %63 = vector.load %arg9[%c0_39, %c0_40] : memref<16x128xbf16, #tpu.memory_space<vmem>>, vector<16x128xbf16>
    %cst_41 = arith.constant dense<0.000000e+00> : vector<8x128xf32>
    %64 = tpu.matmul %62, %63, %cst_41 {dimension_numbers = #tpu.dot_dimension_numbers<[1], [0], [0], [1], [0, 0, 1, 1], [], []>} : vector<8x16xbf16>, vector<16x128xbf16>, vector<8x128xf32> -> vector<8x128xf32>
    %c0_42 = arith.constant 0 : index
    %c0_43 = arith.constant 0 : index
    %65 = vector.load %arg10[%c0_42, %c0_43] : memref<1x128xf32, #tpu.memory_space<vmem>>, vector<1x128xf32>
    %66 = vector.broadcast %65 : vector<1x128xf32> to vector<8x128xf32>
    %67 = arith.addf %64, %66 : vector<8x128xf32>
    %68 = math.tanh %67 : vector<8x128xf32>
    %69 = arith.truncf %68 : vector<8x128xf32> to vector<8x128xbf16>
    %c0_44 = arith.constant 0 : index
    %c0_45 = arith.constant 0 : index
    %70 = vector.load %arg11[%c0_44, %c0_45] : memref<128x128xbf16, #tpu.memory_space<vmem>>, vector<128x128xbf16>
    %cst_46 = arith.constant dense<0.000000e+00> : vector<8x128xf32>
    %71 = tpu.matmul %69, %70, %cst_46 {dimension_numbers = #tpu.dot_dimension_numbers<[1], [0], [0], [1], [0, 0, 1, 1], [], []>} : vector<8x128xbf16>, vector<128x128xbf16>, vector<8x128xf32> -> vector<8x128xf32>
    %c0_47 = arith.constant 0 : index
    %c0_48 = arith.constant 0 : index
    %72 = vector.load %arg12[%c0_47, %c0_48] : memref<1x128xf32, #tpu.memory_space<vmem>>, vector<1x128xf32>
    %73 = vector.broadcast %72 : vector<1x128xf32> to vector<8x128xf32>
    %74 = arith.addf %71, %73 : vector<8x128xf32>
    %75 = math.tanh %74 : vector<8x128xf32>
    %76 = arith.truncf %75 : vector<8x128xf32> to vector<8x128xbf16>
    %c0_49 = arith.constant 0 : index
    %c0_50 = arith.constant 0 : index
    %77 = vector.load %arg13[%c0_49, %c0_50] : memref<128x16xbf16, #tpu.memory_space<vmem>>, vector<128x16xbf16>
    %cst_51 = arith.constant dense<0.000000e+00> : vector<8x16xf32>
    %78 = tpu.matmul %76, %77, %cst_51 {dimension_numbers = #tpu.dot_dimension_numbers<[1], [0], [0], [1], [0, 0, 1, 1], [], []>} : vector<8x128xbf16>, vector<128x16xbf16>, vector<8x16xf32> -> vector<8x16xf32>
    %c0_52 = arith.constant 0 : index
    %c0_53 = arith.constant 0 : index
    %79 = vector.load %arg14[%c0_52, %c0_53] : memref<1x16xf32, #tpu.memory_space<vmem>>, vector<1x16xf32>
    %80 = vector.broadcast %79 : vector<1x16xf32> to vector<8x16xf32>
    %81 = arith.addf %78, %80 : vector<8x16xf32>
    %cst_54 = arith.constant 0.333333343 : f32
    %82 = vector.broadcast %cst_54 : f32 to vector<8x16xf32>
    %83 = arith.mulf %56, %82 : vector<8x16xf32>
    %84 = arith.subf %81, %83 : vector<8x16xf32>
    %cst_55 = arith.constant 1.000000e+00 : f32
    %85 = vector.broadcast %cst_55 : f32 to vector<8x16xf32>
    %86 = arith.mulf %85, %84 : vector<8x16xf32>
    %87 = arith.addf %36, %86 : vector<8x16xf32>
    %88 = arith.truncf %87 : vector<8x16xf32> to vector<8x16xbf16>
    %c0_56 = arith.constant 0 : index
    %c0_57 = arith.constant 0 : index
    %89 = vector.load %arg9[%c0_56, %c0_57] : memref<16x128xbf16, #tpu.memory_space<vmem>>, vector<16x128xbf16>
    %cst_58 = arith.constant dense<0.000000e+00> : vector<8x128xf32>
    %90 = tpu.matmul %88, %89, %cst_58 {dimension_numbers = #tpu.dot_dimension_numbers<[1], [0], [0], [1], [0, 0, 1, 1], [], []>} : vector<8x16xbf16>, vector<16x128xbf16>, vector<8x128xf32> -> vector<8x128xf32>
    %c0_59 = arith.constant 0 : index
    %c0_60 = arith.constant 0 : index
    %91 = vector.load %arg10[%c0_59, %c0_60] : memref<1x128xf32, #tpu.memory_space<vmem>>, vector<1x128xf32>
    %92 = vector.broadcast %91 : vector<1x128xf32> to vector<8x128xf32>
    %93 = arith.addf %90, %92 : vector<8x128xf32>
    %94 = math.tanh %93 : vector<8x128xf32>
    %95 = arith.truncf %94 : vector<8x128xf32> to vector<8x128xbf16>
    %c0_61 = arith.constant 0 : index
    %c0_62 = arith.constant 0 : index
    %96 = vector.load %arg11[%c0_61, %c0_62] : memref<128x128xbf16, #tpu.memory_space<vmem>>, vector<128x128xbf16>
    %cst_63 = arith.constant dense<0.000000e+00> : vector<8x128xf32>
    %97 = tpu.matmul %95, %96, %cst_63 {dimension_numbers = #tpu.dot_dimension_numbers<[1], [0], [0], [1], [0, 0, 1, 1], [], []>} : vector<8x128xbf16>, vector<128x128xbf16>, vector<8x128xf32> -> vector<8x128xf32>
    %c0_64 = arith.constant 0 : index
    %c0_65 = arith.constant 0 : index
    %98 = vector.load %arg12[%c0_64, %c0_65] : memref<1x128xf32, #tpu.memory_space<vmem>>, vector<1x128xf32>
    %99 = vector.broadcast %98 : vector<1x128xf32> to vector<8x128xf32>
    %100 = arith.addf %97, %99 : vector<8x128xf32>
    %101 = math.tanh %100 : vector<8x128xf32>
    %102 = arith.truncf %101 : vector<8x128xf32> to vector<8x128xbf16>
    %c0_66 = arith.constant 0 : index
    %c0_67 = arith.constant 0 : index
    %103 = vector.load %arg13[%c0_66, %c0_67] : memref<128x16xbf16, #tpu.memory_space<vmem>>, vector<128x16xbf16>
    %cst_68 = arith.constant dense<0.000000e+00> : vector<8x16xf32>
    %104 = tpu.matmul %102, %103, %cst_68 {dimension_numbers = #tpu.dot_dimension_numbers<[1], [0], [0], [1], [0, 0, 1, 1], [], []>} : vector<8x128xbf16>, vector<128x16xbf16>, vector<8x16xf32> -> vector<8x16xf32>
    %c0_69 = arith.constant 0 : index
    %c0_70 = arith.constant 0 : index
    %105 = vector.load %arg14[%c0_69, %c0_70] : memref<1x16xf32, #tpu.memory_space<vmem>>, vector<1x16xf32>
    %106 = vector.broadcast %105 : vector<1x16xf32> to vector<8x16xf32>
    %107 = arith.addf %104, %106 : vector<8x16xf32>
    %108 = arith.subf %56, %81 : vector<8x16xf32>
    %109 = arith.addf %108, %107 : vector<8x16xf32>
    %cst_71 = arith.constant 1.000000e+00 : f32
    %110 = vector.broadcast %cst_71 : f32 to vector<8x16xf32>
    %111 = arith.mulf %110, %109 : vector<8x16xf32>
    %112 = arith.addf %36, %111 : vector<8x16xf32>
    %113 = arith.truncf %112 : vector<8x16xf32> to vector<8x16xbf16>
    %c0_72 = arith.constant 0 : index
    %c0_73 = arith.constant 0 : index
    %114 = vector.load %arg9[%c0_72, %c0_73] : memref<16x128xbf16, #tpu.memory_space<vmem>>, vector<16x128xbf16>
    %cst_74 = arith.constant dense<0.000000e+00> : vector<8x128xf32>
    %115 = tpu.matmul %113, %114, %cst_74 {dimension_numbers = #tpu.dot_dimension_numbers<[1], [0], [0], [1], [0, 0, 1, 1], [], []>} : vector<8x16xbf16>, vector<16x128xbf16>, vector<8x128xf32> -> vector<8x128xf32>
    %c0_75 = arith.constant 0 : index
    %c0_76 = arith.constant 0 : index
    %116 = vector.load %arg10[%c0_75, %c0_76] : memref<1x128xf32, #tpu.memory_space<vmem>>, vector<1x128xf32>
    %117 = vector.broadcast %116 : vector<1x128xf32> to vector<8x128xf32>
    %118 = arith.addf %115, %117 : vector<8x128xf32>
    %119 = math.tanh %118 : vector<8x128xf32>
    %120 = arith.truncf %119 : vector<8x128xf32> to vector<8x128xbf16>
    %c0_77 = arith.constant 0 : index
    %c0_78 = arith.constant 0 : index
    %121 = vector.load %arg11[%c0_77, %c0_78] : memref<128x128xbf16, #tpu.memory_space<vmem>>, vector<128x128xbf16>
    %cst_79 = arith.constant dense<0.000000e+00> : vector<8x128xf32>
    %122 = tpu.matmul %120, %121, %cst_79 {dimension_numbers = #tpu.dot_dimension_numbers<[1], [0], [0], [1], [0, 0, 1, 1], [], []>} : vector<8x128xbf16>, vector<128x128xbf16>, vector<8x128xf32> -> vector<8x128xf32>
    %c0_80 = arith.constant 0 : index
    %c0_81 = arith.constant 0 : index
    %123 = vector.load %arg12[%c0_80, %c0_81] : memref<1x128xf32, #tpu.memory_space<vmem>>, vector<1x128xf32>
    %124 = vector.broadcast %123 : vector<1x128xf32> to vector<8x128xf32>
    %125 = arith.addf %122, %124 : vector<8x128xf32>
    %126 = math.tanh %125 : vector<8x128xf32>
    %127 = arith.truncf %126 : vector<8x128xf32> to vector<8x128xbf16>
    %c0_82 = arith.constant 0 : index
    %c0_83 = arith.constant 0 : index
    %128 = vector.load %arg13[%c0_82, %c0_83] : memref<128x16xbf16, #tpu.memory_space<vmem>>, vector<128x16xbf16>
    %cst_84 = arith.constant dense<0.000000e+00> : vector<8x16xf32>
    %129 = tpu.matmul %127, %128, %cst_84 {dimension_numbers = #tpu.dot_dimension_numbers<[1], [0], [0], [1], [0, 0, 1, 1], [], []>} : vector<8x128xbf16>, vector<128x16xbf16>, vector<8x16xf32> -> vector<8x16xf32>
    %c0_85 = arith.constant 0 : index
    %c0_86 = arith.constant 0 : index
    %130 = vector.load %arg14[%c0_85, %c0_86] : memref<1x16xf32, #tpu.memory_space<vmem>>, vector<1x16xf32>
    %131 = vector.broadcast %130 : vector<1x16xf32> to vector<8x16xf32>
    %132 = arith.addf %129, %131 : vector<8x16xf32>
    %133 = arith.addf %81, %107 : vector<8x16xf32>
    %cst_87 = arith.constant 3.000000e+00 : f32
    %134 = vector.broadcast %cst_87 : f32 to vector<8x16xf32>
    %135 = arith.mulf %134, %133 : vector<8x16xf32>
    %136 = arith.addf %56, %135 : vector<8x16xf32>
    %137 = arith.addf %136, %132 : vector<8x16xf32>
    %cst_88 = arith.constant 1.000000e+00 : f32
    %138 = vector.broadcast %cst_88 : f32 to vector<8x16xf32>
    %139 = arith.mulf %138, %137 : vector<8x16xf32>
    %cst_89 = arith.constant 1.250000e-01 : f32
    %140 = vector.broadcast %cst_89 : f32 to vector<8x16xf32>
    %141 = arith.mulf %139, %140 : vector<8x16xf32>
    %142 = arith.addf %36, %141 : vector<8x16xf32>
    %143 = arith.truncf %142 : vector<8x16xf32> to vector<8x16xbf16>
    %c0_90 = arith.constant 0 : index
    %c0_91 = arith.constant 0 : index
    %144 = vector.load %arg15[%c0_90, %c0_91] : memref<16x512xbf16, #tpu.memory_space<vmem>>, vector<16x512xbf16>
    %cst_92 = arith.constant dense<0.000000e+00> : vector<8x512xf32>
    %145 = tpu.matmul %143, %144, %cst_92 {dimension_numbers = #tpu.dot_dimension_numbers<[1], [0], [0], [1], [0, 0, 1, 1], [], []>} : vector<8x16xbf16>, vector<16x512xbf16>, vector<8x512xf32> -> vector<8x512xf32>
    %c0_93 = arith.constant 0 : index
    %c0_94 = arith.constant 0 : index
    %146 = vector.load %arg16[%c0_93, %c0_94] : memref<1x512xf32, #tpu.memory_space<vmem>>, vector<1x512xf32>
    %147 = vector.broadcast %146 : vector<1x512xf32> to vector<8x512xf32>
    %148 = arith.addf %145, %147 : vector<8x512xf32>
    %cst_95 = arith.constant 0.000000e+00 : f32
    %149 = vector.broadcast %cst_95 : f32 to vector<8x512xf32>
    %150 = arith.maximumf %148, %149 : vector<8x512xf32>
    %151 = arith.truncf %150 : vector<8x512xf32> to vector<8x512xbf16>
    %c0_96 = arith.constant 0 : index
    %c0_97 = arith.constant 0 : index
    %152 = vector.load %arg17[%c0_96, %c0_97] : memref<512x512xbf16, #tpu.memory_space<vmem>>, vector<512x512xbf16>
    %cst_98 = arith.constant dense<0.000000e+00> : vector<8x512xf32>
    %153 = tpu.matmul %151, %152, %cst_98 {dimension_numbers = #tpu.dot_dimension_numbers<[1], [0], [0], [1], [0, 0, 1, 1], [], []>} : vector<8x512xbf16>, vector<512x512xbf16>, vector<8x512xf32> -> vector<8x512xf32>
    %c0_99 = arith.constant 0 : index
    %c0_100 = arith.constant 0 : index
    %154 = vector.load %arg18[%c0_99, %c0_100] : memref<1x512xf32, #tpu.memory_space<vmem>>, vector<1x512xf32>
    %155 = vector.broadcast %154 : vector<1x512xf32> to vector<8x512xf32>
    %156 = arith.addf %153, %155 : vector<8x512xf32>
    %cst_101 = arith.constant 0.000000e+00 : f32
    %157 = vector.broadcast %cst_101 : f32 to vector<8x512xf32>
    %158 = arith.maximumf %156, %157 : vector<8x512xf32>
    %159 = arith.truncf %158 : vector<8x512xf32> to vector<8x512xbf16>
    %c0_102 = arith.constant 0 : index
    %c0_103 = arith.constant 0 : index
    %160 = vector.load %arg19[%c0_102, %c0_103] : memref<512x16xbf16, #tpu.memory_space<vmem>>, vector<512x16xbf16>
    %cst_104 = arith.constant dense<0.000000e+00> : vector<8x16xf32>
    %161 = tpu.matmul %159, %160, %cst_104 {dimension_numbers = #tpu.dot_dimension_numbers<[1], [0], [0], [1], [0, 0, 1, 1], [], []>} : vector<8x512xbf16>, vector<512x16xbf16>, vector<8x16xf32> -> vector<8x16xf32>
    %c0_105 = arith.constant 0 : index
    %c0_106 = arith.constant 0 : index
    %162 = vector.load %arg20[%c0_105, %c0_106] : memref<1x16xf32, #tpu.memory_space<vmem>>, vector<1x16xf32>
    %163 = vector.broadcast %162 : vector<1x16xf32> to vector<8x16xf32>
    %164 = arith.addf %161, %163 : vector<8x16xf32>
    %165 = tpu.concatenate %164, %23, %33 in 1 : vector<8x16xf32>, vector<8x16xf32>, vector<8x16xf32> -> vector<8x48xf32>
    %c0_107 = arith.constant 0 : index
    %c0_108 = arith.constant 0 : index
    %166 = vector.load %arg21[%c0_107, %c0_108] : memref<8x48xf32, #tpu.memory_space<vmem>>, vector<8x48xf32>
    tpu.vector_store %arg21[%c0_107, %c0_108], %165 {strides = array<i32>} : memref<8x48xf32, #tpu.memory_space<vmem>>, vector<8x48xf32>,
    return
  }
  func.func @transform_0(%arg0: i32) -> (i32, i32) {
    %c0_i32 = arith.constant 0 : i32
    %c0_i32_0 = arith.constant 0 : i32
    return %arg0, %c0_i32 : i32, i32
  }
  func.func @transform_1(%arg0: i32) -> (i32, i32) {
    %c0_i32 = arith.constant 0 : i32
    %c0_i32_0 = arith.constant 0 : i32
    return %arg0, %c0_i32 : i32, i32
  }
  func.func @transform_2(%arg0: i32) -> (i32, i32) {
    %c0_i32 = arith.constant 0 : i32
    %c0_i32_0 = arith.constant 0 : i32
    %c0_i32_1 = arith.constant 0 : i32
    return %c0_i32, %c0_i32_0 : i32, i32
  }
  func.func @transform_3(%arg0: i32) -> (i32, i32) {
    %c0_i32 = arith.constant 0 : i32
    %c0_i32_0 = arith.constant 0 : i32
    %c0_i32_1 = arith.constant 0 : i32
    return %c0_i32, %c0_i32_0 : i32, i32
  }
  func.func @transform_4(%arg0: i32) -> (i32, i32) {
    %c0_i32 = arith.constant 0 : i32
    %c0_i32_0 = arith.constant 0 : i32
    %c0_i32_1 = arith.constant 0 : i32
    return %c0_i32, %c0_i32_0 : i32, i32
  }
  func.func @transform_5(%arg0: i32) -> (i32, i32) {
    %c0_i32 = arith.constant 0 : i32
    %c0_i32_0 = arith.constant 0 : i32
    %c0_i32_1 = arith.constant 0 : i32
    return %c0_i32, %c0_i32_0 : i32, i32
  }
  func.func @transform_6(%arg0: i32) -> (i32, i32) {
    %c0_i32 = arith.constant 0 : i32
    %c0_i32_0 = arith.constant 0 : i32
    %c0_i32_1 = arith.constant 0 : i32
    return %c0_i32, %c0_i32_0 : i32, i32
  }
  func.func @transform_7(%arg0: i32) -> (i32, i32) {
    %c0_i32 = arith.constant 0 : i32
    %c0_i32_0 = arith.constant 0 : i32
    %c0_i32_1 = arith.constant 0 : i32
    return %c0_i32, %c0_i32_0 : i32, i32
  }
  func.func @transform_8(%arg0: i32) -> (i32, i32) {
    %c0_i32 = arith.constant 0 : i32
    %c0_i32_0 = arith.constant 0 : i32
    %c0_i32_1 = arith.constant 0 : i32
    return %c0_i32, %c0_i32_0 : i32, i32
  }
  func.func @transform_9(%arg0: i32) -> (i32, i32) {
    %c0_i32 = arith.constant 0 : i32
    %c0_i32_0 = arith.constant 0 : i32
    %c0_i32_1 = arith.constant 0 : i32
    return %c0_i32, %c0_i32_0 : i32, i32
  }
  func.func @transform_10(%arg0: i32) -> (i32, i32) {
    %c0_i32 = arith.constant 0 : i32
    %c0_i32_0 = arith.constant 0 : i32
    %c0_i32_1 = arith.constant 0 : i32
    return %c0_i32, %c0_i32_0 : i32, i32
  }
  func.func @transform_11(%arg0: i32) -> (i32, i32) {
    %c0_i32 = arith.constant 0 : i32
    %c0_i32_0 = arith.constant 0 : i32
    %c0_i32_1 = arith.constant 0 : i32
    return %c0_i32, %c0_i32_0 : i32, i32
  }
  func.func @transform_12(%arg0: i32) -> (i32, i32) {
    %c0_i32 = arith.constant 0 : i32
    %c0_i32_0 = arith.constant 0 : i32
    %c0_i32_1 = arith.constant 0 : i32
    return %c0_i32, %c0_i32_0 : i32, i32
  }
  func.func @transform_13(%arg0: i32) -> (i32, i32) {
    %c0_i32 = arith.constant 0 : i32
    %c0_i32_0 = arith.constant 0 : i32
    %c0_i32_1 = arith.constant 0 : i32
    return %c0_i32, %c0_i32_0 : i32, i32
  }
  func.func @transform_14(%arg0: i32) -> (i32, i32) {
    %c0_i32 = arith.constant 0 : i32
    %c0_i32_0 = arith.constant 0 : i32
    %c0_i32_1 = arith.constant 0 : i32
    return %c0_i32, %c0_i32_0 : i32, i32
  }
  func.func @transform_15(%arg0: i32) -> (i32, i32) {
    %c0_i32 = arith.constant 0 : i32
    %c0_i32_0 = arith.constant 0 : i32
    %c0_i32_1 = arith.constant 0 : i32
    return %c0_i32, %c0_i32_0 : i32, i32
  }
  func.func @transform_16(%arg0: i32) -> (i32, i32) {
    %c0_i32 = arith.constant 0 : i32
    %c0_i32_0 = arith.constant 0 : i32
    %c0_i32_1 = arith.constant 0 : i32
    return %c0_i32, %c0_i32_0 : i32, i32
  }
  func.func @transform_17(%arg0: i32) -> (i32, i32) {
    %c0_i32 = arith.constant 0 : i32
    %c0_i32_0 = arith.constant 0 : i32
    %c0_i32_1 = arith.constant 0 : i32
    return %c0_i32, %c0_i32_0 : i32, i32
  }
  func.func @transform_18(%arg0: i32) -> (i32, i32) {
    %c0_i32 = arith.constant 0 : i32
    %c0_i32_0 = arith.constant 0 : i32
    %c0_i32_1 = arith.constant 0 : i32
    return %c0_i32, %c0_i32_0 : i32, i32
  }
  func.func @transform_19(%arg0: i32) -> (i32, i32) {
    %c0_i32 = arith.constant 0 : i32
    %c0_i32_0 = arith.constant 0 : i32
    %c0_i32_1 = arith.constant 0 : i32
    return %c0_i32, %c0_i32_0 : i32, i32
  }
  func.func @transform_20(%arg0: i32) -> (i32, i32) {
    %c0_i32 = arith.constant 0 : i32
    %c0_i32_0 = arith.constant 0 : i32
    return %arg0, %c0_i32 : i32, i32
  }
}

</mosaic_0001>

<bundles_post_ra>
// kernel: tpu_custom_call.1
= control target key start
LH: loop header
LB: loop body
LE: loop exit
PB: predicated region body
PF: predicated region fallthrough
CT: control target
= control target key end

     0   :  { %s6723_s0 = inlined_call_operand.vmem [shape: f32[32,16], index: 0, kind: input, shape index: {}]   ;;  %s6724_s1 = inlined_call_operand.vmem [shape: f32[32,16], index: 1, kind: input, shape index: {}]   ;;  %s6725_s2 = inlined_call_operand.vmem [shape: bf16[16,512], index: 2, kind: input, shape index: {}]   ;;  %s6726_s3 = inlined_call_operand.vmem [shape: f32[1,512], index: 3, kind: input, shape index: {}]   ;;  %s6727_s4 = inlined_call_operand.hbm [shape: bf16[512,512], index: 4, kind: input, shape index: {}]   ;;  %s6728_s5 = inlined_call_operand.vmem [shape: f32[1,512], index: 5, kind: input, shape index: {}]   ;;  %s6729_s6 = inlined_call_operand.vmem [shape: bf16[512,32], index: 6, kind: input, shape index: {}]   ;;  %s6730_s7 = inlined_call_operand.vmem [shape: f32[1,32], index: 7, kind: input, shape index: {}]   ;;  %s6731_s8 = inlined_call_operand.vmem [shape: bf16[16,128], index: 8, kind: input, shape index: {}]   ;;  %s6732_s9 = inlined_call_operand.vmem [shape: f32[1,128], index: 9, kind: input, shape index: {}]   ;;  %s6733_s10 = inlined_call_operand.vmem [shape: bf16[128,128], index: 10, kind: input, shape index: {}]   ;;  %s6734_s11 = inlined_call_operand.vmem [shape: f32[1,128], index: 11, kind: input, shape index: {}]   ;;  %s6735_s12 = inlined_call_operand.vmem [shape: bf16[128,16], index: 12, kind: input, shape index: {}]   ;;  %s6736_s13 = inlined_call_operand.vmem [shape: f32[1,16], index: 13, kind: input, shape index: {}]   ;;  %s6737_s14 = inlined_call_operand.vmem [shape: bf16[16,512], index: 14, kind: input, shape index: {}]   ;;  %s6738_s15 = inlined_call_operand.vmem [shape: f32[1,512], index: 15, kind: input, shape index: {}]   ;;  %s6739_s16 = inlined_call_operand.hbm [shape: bf16[512,512], index: 16, kind: input, shape index: {}]   ;;  %s6740_s17 = inlined_call_operand.vmem [shape: f32[1,512], index: 17, kind: input, shape index: {}]   ;;  %s6741_s18 = inlined_call_operand.vmem [shape: bf16[512,16], index: 18, kind: input, shape index: {}]   ;;  %s6742_s19 = inlined_call_operand.vmem [shape: f32[1,16], index: 19, kind: input, shape index: {}]   ;;  %s6743_s20 = inlined_call_operand.hbm [shape: f32[32,48], index: 20, kind: output, shape index: {}]  }
   0x1   :  { %6759 = sst [smem:[#allocation19_spill]] %s6723_s0 }
   0x2   :  { %6760 = sst [smem:[#allocation20_spill]] %s6724_s1 }
   0x3   :  { %6761 = sst [smem:[#allocation21_spill]] %s6725_s2 }
   0x4   :  { %6762 = sst [smem:[#allocation22_spill]] %s6726_s3 }
   0x5   :  { %6763 = sst [smem:[#allocation23_spill]] %s6727_s4 }
   0x6   :  { %6764 = sst [smem:[#allocation24_spill]] %s6742_s19 }
   0x7   :  { %6765 = sst [smem:[#allocation25_spill]] %s6743_s20 }
   0x8   :  { %25 = vsyncpa [#allocation3], 0 }
   0x9   :  { %26 = vsyncpa [#allocation6], 0 }
   0xa   :  { %27 = vsyncpa [#allocation4], 0 }
   0xb   :  { %29 = vsyncpa [#allocation4 + $0x1], 0  ;;  %s5949_s1 = smov 0   ;;  %s5951_s22 = smov 0  }
   0xc   :  { %s5953_s23 = smov 0   ;;  %s5955_s24 = smov 0  }
   0xd LB: > { %6766 = sst [smem:[#allocation11_spill]] %s5820_s1  ;;  %s5970_s2 = sadd.s32 4294967295, %s5832_s24   ;;  %s5832_s24 = sphi %s5955_s24, %s6798_s24   ;;  %s5828_s23 = sphi %s5953_s23, %s6801_s23   ;;  %s5824_s22 = sphi %s5951_s22, %s6800_s22   ;;  %s5820_s1 = sphi %s5949_s1, %s6799_s1  }
   0xe   : > { %6767 = sst [smem:[#allocation12_spill]] %s5824_s22  ;;  %s4393_s25 = sadd.s32 4294967294, %s5832_s24  }
   0xf   : > { %6768 = sst [smem:[#allocation13_spill]] %s5828_s23  ;;  %s5974_s3 = sadd.s32 1, %s5832_s24  }
  0x10   : > { %6769 = sst [smem:[#allocation14_spill]] %s5832_s24  ;;  %s472_s26 = sadd.s32 1, %s5828_s23 }
  0x11   : > { %6770 = sst [smem:[#allocation15_spill]] %s5974_s3  ;;  %s469_s27 = ssub.s32 %s5832_s24, %s5974_s3 }
  0x12   : > { %p482_p0 = scmp.ne.s32.totalorder %s5828_s23, %s5824_s22  ;;  %p470_p1 = scmp.eq.s32.totalorder %s469_s27, 0 }
  0x13   : > { %p483_p2 = scmp.eq.s32.totalorder %s5970_s2, 3  ;;  %p488_p3 = scmp.ne.s32.totalorder %s5824_s22, %s5820_s1 }
  0x14   : > { %p489_p4 = scmp.eq.s32.totalorder %s4393_s25, 3  ;;  %p4394_p7 = scmp.ge.s32.totalorder %s5832_s24, 1 }
  0x15   : > { %s5985_s28 = scalar_select %p470_p1, %s5828_s23, %s472_s26  }
  0x16   : > { %p5987_p5 = por %p483_p2, %p482_p0  ;;  %p5991_p6 = por %p489_p4, %p488_p3 }
  0x17   : > { %6771 = sst [smem:[#allocation16_spill]] %s5985_s28  ;;  %p496_p8 = scmp.lt.s32.totalorder %s5832_s24, 5 }
  0x18   : > { %s6772_s4 = scalar_select %p5987_p5, 1, 0 }
  0x19   : > { %s6774_s29 = scalar_select %p5991_p6, 1, 0 }
  0x1a   : > { %6773 = sst [smem:[#allocation17_spill]] %s6772_s4  ;;  %p6753_p9 = scmp.eq.s32.totalorder %s5970_s2, 0 }
  0x1b   : > { %6775 = sst [smem:[#allocation18_spill]] %s6774_s29  ;;  %p5998_p10 = pnand %p4394_p7, %p496_p8 }
  0x1c   : > { %s5834_s0 = smov [#allocation2]   ;;  %s5835_s26 = smov [#allocation5]  }
  0x1d   : > { %s6776_s30 = scalar_select %p5998_p10, 1, 0 }
  0x1e   : > { %s514_s21 = sshll.u32 %s5834_s0, 4  ;;  %p5152_p11 = pneg %p5998_p10  ;;  %s515_s21 = int_to_ptr.vmem [resolvable:$true] %s514_s21 }
  0x1f   : > { %s560_s27 = sshll.u32 %s5835_s26, 4  ;;  %s6778_s3 = sld [smem:[#allocation23_spill]]  ;;  %s6010_s27 = int_to_ptr.vmem [resolvable:$true] %s560_s27 }
  0x20   : > { %p6006_p12 = pnand %p6753_p9, %p5152_p11 }
  0x22   : > { %p5708_p0 = pneg %p6006_p12 }
  0x25   : > { %s5706_s29 = scalar_lea.hbm %s6778_s3, 16384 }
  0x26   : > { %p5707_p13 = scmp.ne.s32.totalorder %s6778_s3, %s5706_s29  ;;  %p5713_p3 = scmp.lt.u32.totalorder %s5706_s29, %s6778_s3 }
  0x28   : > { %p5709_p1 = pnand %p5708_p0, %p5707_p13 }
  0x2a   : > { %p5710_p2 = pneg %p5709_p1 }
  0x2c   : > { %p5715_p4 = pnand %p5713_p3, %p5710_p2 }
  0x2e   : > { %5718 = shalt.err (!%p5715_p4)
}
  0x2f   : > { %s5719_s26 = scalar_lea.vmem %s515_s21, 16384  ;;  %p5727_p9 = scmp.lt.s32.totalorder %s515_s21, %s515_s21 }
  0x30   : > { %p5720_p7 = scmp.ne.s32.totalorder %s515_s21, %s5719_s26  ;;  %p5728_p6 = scmp.lt.s32.totalorder %s5719_s26, %s5719_s26 }
  0x32   : > { %p5722_p8 = pnand %p5720_p7, %p5708_p0  ;;  %p5729_p5 = por %p5728_p6, %p5727_p9 }
  0x34   : > { %p5723_p11 = pneg %p5722_p8 }
  0x36   : > { %p5730_p10 = pnand %p5729_p5, %p5723_p11 }
  0x38   : > { %5733 = shalt.err (!%p5730_p10)
}
  0x39   : > { %s5836_s1 = smov 256   ;;  %s5837_s23 = smov 16  }
  0x3a   : > { %5155 = dma.hbm_to_vmem [thread:$0]  (!%p6006_p12), %s6778_s3, 16384, %s515_s21, [#allocation3], %s5836_s1, %s5836_s1, %s5837_s23  }
  0x3b   : > { %s5734_s0 = scalar_lea.hbm %s6739_s16, 16384 }
  0x3c   : > { %p5735_p13 = scmp.ne.s32.totalorder %s6739_s16, %s5734_s0  ;;  %p5741_p9 = scmp.lt.u32.totalorder %s5734_s0, %s6739_s16 }
  0x3e   : > { %p5737_p5 = pnand %p5735_p13, %p5708_p0 }
  0x40   : > { %p5738_p6 = pneg %p5737_p5 }
  0x42   : > { %p5743_p10 = pnand %p5741_p9, %p5738_p6 }
  0x44   : > { %5746 = shalt.err (!%p5743_p10)
}
  0x45   : > { %s5747_s21 = scalar_lea.vmem %s6010_s27, 16384  ;;  %p5755_p4 = scmp.lt.s32.totalorder %s6010_s27, %s6010_s27 }
  0x46   : > { %p5748_p1 = scmp.ne.s32.totalorder %s6010_s27, %s5747_s21  ;;  %p5756_p7 = scmp.lt.s32.totalorder %s5747_s21, %s5747_s21 }
  0x48   : > { %p5750_p2 = pnand %p5748_p1, %p5708_p0  ;;  %p5757_p8 = por %p5756_p7, %p5755_p4 }
  0x4a   : > { %p5751_p3 = pneg %p5750_p2 }
  0x4c   : > { %p5758_p11 = pnand %p5757_p8, %p5751_p3 }
  0x4e   : > { %5761 = shalt.err (!%p5758_p11)
}
  0x4f   : > { %5158 = dma.hbm_to_vmem [thread:$0]  (!%p6006_p12), %s6739_s16, 16384, %s6010_s27, [#allocation6], %s5836_s1, %s5836_s1, %s5837_s23  }
  0x50   : > { %p6779_p13 = scmp.ne.s32.totalorder %s6776_s30, 0 }
  0x51   : > { %p6780_p5 = scmp.eq.s32.totalorder (!%p6779_p13), %s5970_s2, 0 }
  0x52   : > { %599 = sbr.rel (%p6779_p13) target bundleno = 4421 (0x1145), region = 100 }
  0x59   : > { %5807 = dma.done.wait (%p6780_p5), [#allocation3], 16384   ;;  %p6781_p0 = pmov %p6780_p5 }
  0x5b   : > { %5809 = vsyncadd (%p6781_p0), [#allocation3], 4294950912  ;;  %p6782_p6 = pmov %p6781_p0 }
  0x5c   : > { %p6783_p9 = pmov %p6781_p0 }
  0x5d   : > { %5811 = dma.done.wait (%p6782_p6), [#allocation6], 16384  }
  0x5e   : > { %5813 = vsyncadd (%p6783_p9), [#allocation6], 4294950912  ;;  %p664_p10 = scmp.lt.s32.totalorder %s5970_s2, 3  ;;  %v5838_v0 = vmov 0   ;;  %s6784_s1 = sld [smem:[#allocation19_spill]]  ;;  %vm721_vm0 = vcmask 130048  }
  0x5f   : > { %757 = vmatprep.mubr.bf16.mxu0 %v5838_v0  ;;  %798 = vmatprep.mubr.bf16.mxu1 %v5838_v0  ;;  %s6785_s28 = sld [smem:[#allocation21_spill]]  ;;  %v5215_v7 = vld [vmem:[#allocation2] ss:$16 sps:$4 sm:$0xff]   ;;  %v5217_v8 = vld [vmem:[#allocation2 + $0x4] ss:$16 sps:$4 sm:$0xff]   ;;  %s6787_s21 = sld [smem:[#allocation20_spill]] }
  0x60   : > { %s6073_s4 = scalar_select %p664_p10, %s5970_s2, 3  ;;  %v5218_v9 = vld [vmem:[#allocation2 + $0x8] ss:$16 sps:$4 sm:$0xff]   ;;  %v5220_v10 = vld [vmem:[#allocation2 + $0xc] ss:$16 sps:$4 sm:$0xff]   ;;  %vm5841_vm1 = vmmov 0  }
  0x61   : > { %v5223_v11 = vld [vmem:[#allocation2 + $0x24] ss:$16 sps:$4 sm:$0xff]   ;;  %v5221_v12 = vld [vmem:[#allocation2 + $0x20] ss:$16 sps:$4 sm:$0xff]   ;;  %v5226_v13 = vld [vmem:[#allocation2 + $0x2c] ss:$16 sps:$4 sm:$0xff]  }
  0x62   : > { %s4402_s30 = sshll.u32 %s6073_s4, 3  ;;  %v5224_v14 = vld [vmem:[#allocation2 + $0x28] ss:$16 sps:$4 sm:$0xff]   ;;  %v5229_v15 = vld [vmem:[#allocation2 + $0x44] ss:$16 sps:$4 sm:$0xff]   ;;  %s5839_s22 = smov 16  }
  0x63   : > { %v5232_v16 = vld [vmem:[#allocation2 + $0x4c] ss:$16 sps:$4 sm:$0xff]   ;;  %v5227_v17 = vld [vmem:[#allocation2 + $0x40] ss:$16 sps:$4 sm:$0xff]   ;;  %v5235_v18 = vld [vmem:[#allocation2 + $0x64] ss:$16 sps:$4 sm:$0xff]  }
  0x64   : > { %s667_s23 = scalar_lea.vmem %s6784_s1, %s4402_s30  ;;  %v5230_v19 = vld [vmem:[#allocation2 + $0x48] ss:$16 sps:$4 sm:$0xff]   ;;  %v5238_v20 = vld [vmem:[#allocation2 + $0x6c] ss:$16 sps:$4 sm:$0xff]   ;;  %v5233_v21 = vld [vmem:[#allocation2 + $0x60] ss:$16 sps:$4 sm:$0xff]  }
  0x65   : > { %v5209_v1 = vld [vmem:[%s6785_s28 + $0x4] ss:$16 sps:$4 sm:$0xff]   ;;  %v5211_v2 = vld [vmem:[%s6785_s28] ss:$16 sps:$4 sm:$0xff]   ;;  %v5212_v5 = vld [vmem:[%s6785_s28 + $0xc] ss:$16 sps:$4 sm:$0xff]   ;;  %s671_s19 = scalar_lea.vmem %s6787_s21, %s4402_s30 }
  0x66   : > { %v673_v3 = vld [vmem:[%s667_s23] sm:$0xff]  ;;  %725 = vmatprep.subr.bf16.mxu0 %v5209_v1  ;;  %v5214_v6 = vld [vmem:[%s6785_s28 + $0x8] ss:$16 sps:$4 sm:$0xff]   ;;  %766 = vmatprep.subr.bf16.mxu1 %v5212_v5  ;;  %v5244_v24 = vld [vmem:[#allocation2 + $0x8c] ss:$16 sps:$4 sm:$0xff]   ;;  %s6786_s1 = sld [smem:[#allocation22_spill]] }
  0x67   : > { %v674_v4 = vpack.c.bf16 %v673_v3, %v673_v3  ;;  %726 = vmatpush1.bf16.msra.mxu0 %v5211_v2  ;;  %767 = vmatpush1.bf16.msra.mxu1 %v5214_v6  ;;  %v5241_v22 = vld [vmem:[#allocation2 + $0x84] ss:$16 sps:$4 sm:$0xff]   ;;  %v5236_v23 = vld [vmem:[#allocation2 + $0x68] ss:$16 sps:$4 sm:$0xff]   ;;  %v5239_v25 = vld [vmem:[#allocation2 + $0x80] ss:$16 sps:$4 sm:$0xff]  }
  0x68   : > { %1605 = vmatprep.subr.bf16.mxu0 %v5217_v8  ;;  %1687 = vmatprep.subr.bf16.mxu1 %v5220_v10  ;;  %v5247_v26 = vld [vmem:[#allocation2 + $0xa4] ss:$16 sps:$4 sm:$0xff]   ;;  %v5242_v27 = vld [vmem:[#allocation2 + $0x88] ss:$16 sps:$4 sm:$0xff]   ;;  %v5250_v28 = vld [vmem:[#allocation2 + $0xac] ss:$16 sps:$4 sm:$0xff]   ;;  %v681_v10 = vlaneseq }
  0x69   : > { %v5245_v29 = vld [vmem:[#allocation2 + $0xa0] ss:$16 sps:$4 sm:$0xff]   ;;  %v5253_v30 = vld [vmem:[#allocation2 + $0xc4] ss:$16 sps:$4 sm:$0xff]   ;;  %v5248_v31 = vld [vmem:[#allocation2 + $0xa8] ss:$16 sps:$4 sm:$0xff]  }
  0x6a   : > { %4408 = vmatmul.mubr.msk.bf16.vlgmr.msra.gmra.mrb[0].mxu0 %vm721_vm0, %v674_v4  ;;  %4409 = vmatmul.mubr.msk.bf16.vlgmr.msra.gmra.mrb[0].mxu1 %vm721_vm0, %v674_v4  ;;  %v5256_v32 = vld [vmem:[#allocation2 + $0xcc] ss:$16 sps:$4 sm:$0xff]   ;;  %v5251_v33 = vld [vmem:[#allocation2 + $0xc0] ss:$16 sps:$4 sm:$0xff]   ;;  %v5259_v34 = vld [vmem:[#allocation2 + $0xe4] ss:$16 sps:$4 sm:$0xff]  }
  0x6b   : > { %1606 = vmatpush1.bf16.msra.mxu0 %v5215_v7  ;;  %1688 = vmatpush1.bf16.msra.mxu1 %v5218_v9  ;;  %v5254_v35 = vld [vmem:[#allocation2 + $0xc8] ss:$16 sps:$4 sm:$0xff]   ;;  %v5262_v36 = vld [vmem:[#allocation2 + $0xec] ss:$16 sps:$4 sm:$0xff]   ;;  %v5257_v37 = vld [vmem:[#allocation2 + $0xe0] ss:$16 sps:$4 sm:$0xff]  }
  0x6c   : > { %1607 = vmatprep.subr.bf16.mxu0 %v5223_v11  ;;  %1689 = vmatprep.subr.bf16.mxu1 %v5226_v13  ;;  %v5265_v38 = vld [vmem:[#allocation2 + $0x104] ss:$16 sps:$4 sm:$0xff]   ;;  %v5260_v39 = vld [vmem:[#allocation2 + $0xe8] ss:$16 sps:$4 sm:$0xff]   ;;  %v5268_v40 = vld [vmem:[#allocation2 + $0x10c] ss:$16 sps:$4 sm:$0xff]  }
  0x6d   : > { %v5263_v41 = vld [vmem:[#allocation2 + $0x100] ss:$16 sps:$4 sm:$0xff]   ;;  %v5271_v42 = vld [vmem:[#allocation2 + $0x124] ss:$16 sps:$4 sm:$0xff]   ;;  %v5266_v43 = vld [vmem:[#allocation2 + $0x108] ss:$16 sps:$4 sm:$0xff]  }
  0x6e   : > { %v5269_v44 = vld [vmem:[#allocation2 + $0x120] ss:$16 sps:$4 sm:$0xff]   ;;  %v5274_v45 = vld [vmem:[#allocation2 + $0x12c] ss:$16 sps:$4 sm:$0xff]   ;;  %v5272_v46 = vld [vmem:[#allocation2 + $0x128] ss:$16 sps:$4 sm:$0xff]  }
  0x6f   : > { %1608 = vmatpush1.bf16.msra.mxu0 %v5221_v12  ;;  %1690 = vmatpush1.bf16.msra.mxu1 %v5224_v14  ;;  %v5277_v47 = vld [vmem:[#allocation2 + $0x144] ss:$16 sps:$4 sm:$0xff]   ;;  %v5280_v48 = vld [vmem:[#allocation2 + $0x14c] ss:$16 sps:$4 sm:$0xff]   ;;  %v5275_v49 = vld [vmem:[#allocation2 + $0x140] ss:$16 sps:$4 sm:$0xff]  }
  0x70   : > { %1609 = vmatprep.subr.bf16.mxu0 %v5229_v15  ;;  %1691 = vmatprep.subr.bf16.mxu1 %v5232_v16  ;;  %v5283_v50 = vld [vmem:[#allocation2 + $0x164] ss:$16 sps:$4 sm:$0xff]   ;;  %v5278_v51 = vld [vmem:[#allocation2 + $0x148] ss:$16 sps:$4 sm:$0xff]   ;;  %v5286_v52 = vld [vmem:[#allocation2 + $0x16c] ss:$16 sps:$4 sm:$0xff]  }
  0x71   : > { %v5281_v53 = vld [vmem:[#allocation2 + $0x160] ss:$16 sps:$4 sm:$0xff]   ;;  %v5289_v54 = vld [vmem:[#allocation2 + $0x184] ss:$16 sps:$4 sm:$0xff]   ;;  %v5284_v55 = vld [vmem:[#allocation2 + $0x168] ss:$16 sps:$4 sm:$0xff]  }
  0x72   : > { %v5292_v56 = vld [vmem:[#allocation2 + $0x18c] ss:$16 sps:$4 sm:$0xff]   ;;  %v5287_v57 = vld [vmem:[#allocation2 + $0x180] ss:$16 sps:$4 sm:$0xff]   ;;  %v5295_v58 = vld [vmem:[#allocation2 + $0x1a4] ss:$16 sps:$4 sm:$0xff]  }
  0x73   : > { %1610 = vmatpush1.bf16.msra.mxu0 %v5227_v17  ;;  %1692 = vmatpush1.bf16.msra.mxu1 %v5230_v19  ;;  %v5290_v59 = vld [vmem:[#allocation2 + $0x188] ss:$16 sps:$4 sm:$0xff]   ;;  %v5298_v60 = vld [vmem:[#allocation2 + $0x1ac] ss:$16 sps:$4 sm:$0xff]   ;;  %v5293_v61 = vld [vmem:[#allocation2 + $0x1a0] ss:$16 sps:$4 sm:$0xff]  }
  0x74   : > { %1611 = vmatprep.subr.bf16.mxu0 %v5235_v18  ;;  %1693 = vmatprep.subr.bf16.mxu1 %v5238_v20  ;;  %v5296_v62 = vld [vmem:[#allocation2 + $0x1a8] ss:$16 sps:$4 sm:$0xff]   ;;  %v5301_v63 = vld [vmem:[#allocation2 + $0x1c4] ss:$16 sps:$4 sm:$0xff]   ;;  %v5304_v1 = vld [vmem:[#allocation2 + $0x1cc] ss:$16 sps:$4 sm:$0xff]  }
  0x75   : > { %v5299_v2 = vld [vmem:[#allocation2 + $0x1c0] ss:$16 sps:$4 sm:$0xff]   ;;  %v5302_v3 = vld [vmem:[#allocation2 + $0x1c8] ss:$16 sps:$4 sm:$0xff]   ;;  %v5307_v4 = vld [vmem:[#allocation2 + $0x1e4] ss:$16 sps:$4 sm:$0xff]  }
  0x76   : > { %v5310_v5 = vld [vmem:[#allocation2 + $0x1ec] ss:$16 sps:$4 sm:$0xff]   ;;  %v5305_v6 = vld [vmem:[#allocation2 + $0x1e0] ss:$16 sps:$4 sm:$0xff]   ;;  %v5308_v7 = vld [vmem:[#allocation2 + $0x1e8] ss:$16 sps:$4 sm:$0xff]  }
  0x77   : > { %1612 = vmatpush1.bf16.msra.mxu0 %v5233_v21  ;;  %1694 = vmatpush1.bf16.msra.mxu1 %v5236_v23  ;;  %v5313_v8 = vld [vmem:[#allocation2 + $0x204] ss:$16 sps:$4 sm:$0xff]   ;;  %v5316_v9 = vld [vmem:[#allocation2 + $0x20c] ss:$16 sps:$4 sm:$0xff]   ;;  %v6095_v11 = vshrl.u32 %v681_v10, 7  ;;  %s6788_s0 = sld [smem:[#allocation12_spill]] }
  0x78   : > { %1613 = vmatprep.subr.bf16.mxu0 %v5241_v22  ;;  %1695 = vmatprep.subr.bf16.mxu1 %v5244_v24  ;;  %v6103_v13 = vld [vmem:[%s6786_s1] sm:$0xf]  ;;  %v5368_v10 = vld [vmem:[#allocation2 + $0x328] ss:$16 sps:$4 sm:$0xff]   ;;  %s6789_s27 = sld [smem:[#allocation24_spill]]  ;;  %s4763_s4 = sshll.u32 %s5970_s2, 7 }
  0x79   : > { %v6098_v12 = vsub.s32 0, %v6095_v11  ;;  %v6106_v14 = vsub.s32 1, %v6095_v11  ;;  %v6109_v15 = vsub.s32 3, %v6095_v11  ;;  %vm4282_vm4 = vcmask 261120   ;;  %s6791_s24 = sld [smem:[#allocation25_spill]] }
  0x7a   : > { %vm4284_vm5 = vcmask 392192  }
  0x7b   : > { %1614 = vmatpush1.bf16.msra.mxu0 %v5239_v25  ;;  %1696 = vmatpush1.bf16.msra.mxu1 %v5242_v27  ;;  %v684_v16 = vrot.slane %v6103_v13, %v6098_v12  ;;  %v688_v17 = vrot.slane %v6103_v13, %v6106_v14  ;;  %v696_v19 = vrot.slane %v6103_v13, %v6109_v15 }
  0x7c   : > { %1615 = vmatprep.subr.bf16.mxu0 %v5247_v26  ;;  %1697 = vmatprep.subr.bf16.mxu1 %v5250_v28 }
  0x7d   : > { %s661_s26 = sand.u32 1, %s6788_s0  }
  0x7e   : > { %s4401_s21 = sshll.u32 %s661_s26, 3  ;;  %s4287_s2 = scalar_lea.sflag [#allocation4], %s661_s26 }
  0x7f   : > { %1616 = vmatpush1.bf16.msra.mxu0 %v5245_v29  ;;  %1698 = vmatpush1.bf16.msra.mxu1 %v5248_v31  ;;  %s663_s30 = scalar_lea.vmem [#allocation7], %s4401_s21  ;;  %s6792_s29 = smov %s6791_s24 }
  0x80   : > { %1617 = vmatprep.subr.bf16.mxu0 %v5253_v30  ;;  %1699 = vmatprep.subr.bf16.mxu1 %v5256_v32  ;;  %s4300_s1 = sshll.u32 %s663_s30, 4  ;;  %s6681_s0 = scalar_lea.hbm %s6791_s24, %s4763_s4  ;;  %s6683_s1 = int_to_ptr.vmem [resolvable:$true] %s4300_s1 }
  0x81   : > { %s5762_s21 = scalar_lea.vmem %s6683_s1, 128 }
  0x82   : > { %p5763_p12 = scmp.ne.s32.totalorder %s6683_s1, %s5762_s21 }
  0x83   : > { %1618 = vmatpush1.bf16.msra.mxu0 %v5251_v33  ;;  %1700 = vmatpush1.bf16.msra.mxu1 %v5254_v35  ;;  %v5311_v33 = vld [vmem:[#allocation2 + $0x200] ss:$16 sps:$4 sm:$0xff]  }
  0x84   : > { %1619 = vmatprep.subr.bf16.mxu0 %v5259_v34  ;;  %1701 = vmatprep.subr.bf16.mxu1 %v5262_v36  ;;  %v5314_v34 = vld [vmem:[#allocation2 + $0x208] ss:$16 sps:$4 sm:$0xff]  }
  0x87   : > { %1620 = vmatpush1.bf16.msra.mxu0 %v5257_v37  ;;  %1702 = vmatpush1.bf16.msra.mxu1 %v5260_v39  ;;  %v5319_v37 = vld [vmem:[#allocation2 + $0x224] ss:$16 sps:$4 sm:$0xff]  }
  0x88   : > { %1621 = vmatprep.subr.bf16.mxu0 %v5265_v38  ;;  %1703 = vmatprep.subr.bf16.mxu1 %v5268_v40  ;;  %v5322_v38 = vld [vmem:[#allocation2 + $0x22c] ss:$16 sps:$4 sm:$0xff]   ;;  %v5317_v40 = vld [vmem:[#allocation2 + $0x220] ss:$16 sps:$4 sm:$0xff]  }
  0x8b   : > { %1622 = vmatpush1.bf16.msra.mxu0 %v5263_v41  ;;  %1704 = vmatpush1.bf16.msra.mxu1 %v5266_v43  ;;  %v5320_v41 = vld [vmem:[#allocation2 + $0x228] ss:$16 sps:$4 sm:$0xff]   ;;  %v5328_v43 = vld [vmem:[#allocation2 + $0x24c] ss:$16 sps:$4 sm:$0xff]  }
  0x8c   : > { %1623 = vmatprep.subr.bf16.mxu0 %v5271_v42  ;;  %1705 = vmatprep.subr.bf16.mxu1 %v5274_v45  ;;  %v5325_v42 = vld [vmem:[#allocation2 + $0x244] ss:$16 sps:$4 sm:$0xff]   ;;  %v5326_v45 = vld [vmem:[#allocation2 + $0x248] ss:$16 sps:$4 sm:$0xff]  }
  0x8f   : > { %1624 = vmatpush1.bf16.msra.mxu0 %v5269_v44  ;;  %1706 = vmatpush1.bf16.msra.mxu1 %v5272_v46  ;;  %v5323_v44 = vld [vmem:[#allocation2 + $0x240] ss:$16 sps:$4 sm:$0xff]   ;;  %v5331_v46 = vld [vmem:[#allocation2 + $0x264] ss:$16 sps:$4 sm:$0xff]  }
  0x90   : > { %1625 = vmatprep.subr.bf16.mxu0 %v5277_v47  ;;  %1707 = vmatprep.subr.bf16.mxu1 %v5280_v48  ;;  %v5334_v47 = vld [vmem:[#allocation2 + $0x26c] ss:$16 sps:$4 sm:$0xff]   ;;  %v5329_v48 = vld [vmem:[#allocation2 + $0x260] ss:$16 sps:$4 sm:$0xff]  }
  0x93   : > { %1626 = vmatpush1.bf16.msra.mxu0 %v5275_v49  ;;  %1708 = vmatpush1.bf16.msra.mxu1 %v5278_v51  ;;  %v5332_v49 = vld [vmem:[#allocation2 + $0x268] ss:$16 sps:$4 sm:$0xff]   ;;  %v5340_v51 = vld [vmem:[#allocation2 + $0x28c] ss:$16 sps:$4 sm:$0xff]  }
  0x94   : > { %1627 = vmatprep.subr.bf16.mxu0 %v5283_v50  ;;  %1709 = vmatprep.subr.bf16.mxu1 %v5286_v52  ;;  %v5337_v50 = vld [vmem:[#allocation2 + $0x284] ss:$16 sps:$4 sm:$0xff]   ;;  %v5335_v52 = vld [vmem:[#allocation2 + $0x280] ss:$16 sps:$4 sm:$0xff]  }
  0x97   : > { %1628 = vmatpush1.bf16.msra.mxu0 %v5281_v53  ;;  %1710 = vmatpush1.bf16.msra.mxu1 %v5284_v55  ;;  %v5338_v53 = vld [vmem:[#allocation2 + $0x288] ss:$16 sps:$4 sm:$0xff]   ;;  %v5346_v55 = vld [vmem:[#allocation2 + $0x2ac] ss:$16 sps:$4 sm:$0xff]  }
  0x98   : > { %1629 = vmatprep.subr.bf16.mxu0 %v5289_v54  ;;  %1711 = vmatprep.subr.bf16.mxu1 %v5292_v56  ;;  %v5343_v54 = vld [vmem:[#allocation2 + $0x2a4] ss:$16 sps:$4 sm:$0xff]   ;;  %v5341_v56 = vld [vmem:[#allocation2 + $0x2a0] ss:$16 sps:$4 sm:$0xff]  }
  0x9b   : > { %1630 = vmatpush1.bf16.msra.mxu0 %v5287_v57  ;;  %1712 = vmatpush1.bf16.msra.mxu1 %v5290_v59  ;;  %v5344_v57 = vld [vmem:[#allocation2 + $0x2a8] ss:$16 sps:$4 sm:$0xff]   ;;  %v5352_v59 = vld [vmem:[#allocation2 + $0x2cc] ss:$16 sps:$4 sm:$0xff]  }
  0x9c   : > { %1631 = vmatprep.subr.bf16.mxu0 %v5295_v58  ;;  %1713 = vmatprep.subr.bf16.mxu1 %v5298_v60  ;;  %v5349_v58 = vld [vmem:[#allocation2 + $0x2c4] ss:$16 sps:$4 sm:$0xff]   ;;  %v5347_v60 = vld [vmem:[#allocation2 + $0x2c0] ss:$16 sps:$4 sm:$0xff]  }
  0x9f   : > { %1632 = vmatpush1.bf16.msra.mxu0 %v5293_v61  ;;  %1714 = vmatpush1.bf16.msra.mxu1 %v5296_v62  ;;  %v5350_v61 = vld [vmem:[#allocation2 + $0x2c8] ss:$16 sps:$4 sm:$0xff]   ;;  %v5355_v62 = vld [vmem:[#allocation2 + $0x2e4] ss:$16 sps:$4 sm:$0xff]  }
  0xa0   : > { %1633 = vmatprep.subr.bf16.mxu0 %v5301_v63  ;;  %1715 = vmatprep.subr.bf16.mxu1 %v5304_v1  ;;  %v5358_v63 = vld [vmem:[#allocation2 + $0x2ec] ss:$16 sps:$4 sm:$0xff]   ;;  %v5353_v1 = vld [vmem:[#allocation2 + $0x2e0] ss:$16 sps:$4 sm:$0xff]  }
  0xa3   : > { %1634 = vmatpush1.bf16.msra.mxu0 %v5299_v2  ;;  %1716 = vmatpush1.bf16.msra.mxu1 %v5302_v3  ;;  %v5356_v2 = vld [vmem:[#allocation2 + $0x2e8] ss:$16 sps:$4 sm:$0xff]   ;;  %v5361_v3 = vld [vmem:[#allocation2 + $0x304] ss:$16 sps:$4 sm:$0xff]  }
  0xa4   : > { %1635 = vmatprep.subr.bf16.mxu0 %v5307_v4  ;;  %1717 = vmatprep.subr.bf16.mxu1 %v5310_v5  ;;  %v5364_v4 = vld [vmem:[#allocation2 + $0x30c] ss:$16 sps:$4 sm:$0xff]   ;;  %v5359_v5 = vld [vmem:[#allocation2 + $0x300] ss:$16 sps:$4 sm:$0xff]  }
  0xa7   : > { %1636 = vmatpush1.bf16.msra.mxu0 %v5305_v6  ;;  %1718 = vmatpush1.bf16.msra.mxu1 %v5308_v7  ;;  %v5362_v6 = vld [vmem:[#allocation2 + $0x308] ss:$16 sps:$4 sm:$0xff]   ;;  %v5367_v7 = vld [vmem:[#allocation2 + $0x324] ss:$16 sps:$4 sm:$0xff]  }
  0xa8   : > { %1646 = vmatprep.subr.bf16.mxu0 %v5313_v8  ;;  %1728 = vmatprep.subr.bf16.mxu1 %v5316_v9  ;;  %v5370_v8 = vld [vmem:[#allocation2 + $0x32c] ss:$16 sps:$4 sm:$0xff]   ;;  %v5365_v9 = vld [vmem:[#allocation2 + $0x320] ss:$16 sps:$4 sm:$0xff]  }
 0x13d   : > { %v759_v18 = vpop.f32.mrb[0].mxu0  ;;  %v6117_v24 = vpop.f32.mrb[0].mxu1 }
 0x13e   : > { %v760_v20 = vadd.f32 %v759_v18, %v684_v16  ;;  %v761_v21 = vpop.f32.mrb[1].mxu0  ;;  %v802_v27 = vpop.f32.mrb[1].mxu1  ;;  %v5373_v16 = vld [vmem:[#allocation2 + $0x344] ss:$16 sps:$4 sm:$0xff]   ;;  %v5371_v18 = vld [vmem:[#allocation2 + $0x340] ss:$16 sps:$4 sm:$0xff]  }
 0x13f   : > { %v762_v22 = vadd.f32 %v761_v21, %v688_v17  ;;  %v763_v23 = vpop.f32.mrb[2].mxu0  ;;  %v803_v29 = vadd.f32 %v802_v27, %v696_v19  ;;  %v804_v30 = vpop.f32.mrb[2].mxu1  ;;  %v5376_v17 = vld [vmem:[#allocation2 + $0x34c] ss:$16 sps:$4 sm:$0xff]   ;;  %v5374_v19 = vld [vmem:[#allocation2 + $0x348] ss:$16 sps:$4 sm:$0xff]  }
 0x140   : > { %v807_v25 = vmax.f32 %v760_v20, 0.0  ;;  %v764_v26 = vpop.f32.mrb[3].mxu0  ;;  %v805_v31 = vpop.f32.mrb[3].mxu1  ;;  %v5379_v20 = vld [vmem:[#allocation2 + $0x364] ss:$16 sps:$4 sm:$0xff]  }
 0x141   : > { %v808_v28 = vmax.f32 %v762_v22, 0.0  ;;  %v810_v35 = vmax.f32 %v803_v29, 0.0  ;;  %v5382_v21 = vld [vmem:[#allocation2 + $0x36c] ss:$16 sps:$4 sm:$0xff]   ;;  %v5377_v22 = vld [vmem:[#allocation2 + $0x360] ss:$16 sps:$4 sm:$0xff]  }
 0x142   : > { %v811_v36 = vpack.c.bf16 %v807_v25, %v807_v25  ;;  %v5380_v23 = vld [vmem:[#allocation2 + $0x368] ss:$16 sps:$4 sm:$0xff]   ;;  %v5385_v25 = vld [vmem:[#allocation2 + $0x384] ss:$16 sps:$4 sm:$0xff]   ;;  %v5388_v26 = vld [vmem:[#allocation2 + $0x38c] ss:$16 sps:$4 sm:$0xff]  }
 0x143   : > { %v812_v32 = vpack.c.bf16 %v808_v28, %v808_v28  ;;  %v814_v39 = vpack.c.bf16 %v810_v35, %v810_v35  ;;  %v5383_v27 = vld [vmem:[#allocation2 + $0x380] ss:$16 sps:$4 sm:$0xff]   ;;  %v5386_v28 = vld [vmem:[#allocation2 + $0x388] ss:$16 sps:$4 sm:$0xff]   ;;  %v6120_v29 = vsub.s32 2, %v6095_v11 }
 0x144   : > { %v5391_v30 = vld [vmem:[#allocation2 + $0x3a4] ss:$16 sps:$4 sm:$0xff]   ;;  %v5394_v31 = vld [vmem:[#allocation2 + $0x3ac] ss:$16 sps:$4 sm:$0xff]  }
 0x145   : > { %1637 = vmatprep.mubr.bf16.mxu0 %v812_v32  ;;  %1719 = vmatprep.mubr.bf16.mxu1 %v812_v32  ;;  %v5389_v32 = vld [vmem:[#allocation2 + $0x3a0] ss:$16 sps:$4 sm:$0xff]   ;;  %v5397_v35 = vld [vmem:[#allocation2 + $0x3c4] ss:$16 sps:$4 sm:$0xff]  }
 0x146   : > { %1638 = vmatmul.mubr.bf16.vlgmr.msra.gmra.mrb[4].mxu0 %v811_v36  ;;  %1720 = vmatmul.mubr.bf16.vlgmr.msra.gmra.mrb[4].mxu1 %v811_v36  ;;  %v5400_v36 = vld [vmem:[#allocation2 + $0x3cc] ss:$16 sps:$4 sm:$0xff]  }
 0x147   : > { %1647 = vmatpush1.bf16.msra.mxu0 %v5311_v33  ;;  %1729 = vmatpush1.bf16.msra.mxu1 %v5314_v34  ;;  %v5392_v33 = vld [vmem:[#allocation2 + $0x3a8] ss:$16 sps:$4 sm:$0xff]   ;;  %v692_v34 = vrot.slane %v6103_v13, %v6120_v29  ;;  %v5407_v13 = vld [vmem:[%s6729_s6 + $0x40] sm:$0xff]  }
 0x148   : > { %1648 = vmatprep.subr.bf16.mxu0 %v5319_v37  ;;  %1730 = vmatprep.subr.bf16.mxu1 %v5322_v38  ;;  %v5395_v37 = vld [vmem:[#allocation2 + $0x3c0] ss:$16 sps:$4 sm:$0xff]   ;;  %v5398_v38 = vld [vmem:[#allocation2 + $0x3c8] ss:$16 sps:$4 sm:$0xff]  }
 0x149   : > { %1678 = vmatprep.mubr.bf16.mxu0 %v814_v39  ;;  %1760 = vmatprep.mubr.bf16.mxu1 %v814_v39  ;;  %v801_v11 = vadd.f32 %v6117_v24, %v692_v34  ;;  %v5403_v39 = vld [vmem:[#allocation2 + $0x3e4] ss:$16 sps:$4 sm:$0xff]  }
 0x14a   : > { %v5409_v24 = vld [vmem:[%s6729_s6] sm:$0xff]  }
 0x14b   : > { %1649 = vmatpush1.bf16.msra.mxu0 %v5317_v40  ;;  %1731 = vmatpush1.bf16.msra.mxu1 %v5320_v41  ;;  %v5406_v40 = vld [vmem:[#allocation2 + $0x3ec] ss:$16 sps:$4 sm:$0xff]   ;;  %v5401_v41 = vld [vmem:[#allocation2 + $0x3e0] ss:$16 sps:$4 sm:$0xff]  }
 0x14c   : > { %1650 = vmatprep.subr.bf16.mxu0 %v5325_v42  ;;  %1732 = vmatprep.subr.bf16.mxu1 %v5328_v43  ;;  %v5404_v42 = vld [vmem:[#allocation2 + $0x3e8] ss:$16 sps:$4 sm:$0xff]   ;;  %v809_v43 = vmax.f32 %v801_v11, 0.0 }
 0x14f   : > { %1651 = vmatpush1.bf16.msra.mxu0 %v5323_v44  ;;  %1733 = vmatpush1.bf16.msra.mxu1 %v5326_v45  ;;  %v5408_v44 = vld [vmem:[%s6729_s6 + $0xc0] sm:$0xff]  }
 0x150   : > { %1652 = vmatprep.subr.bf16.mxu0 %v5331_v46  ;;  %1734 = vmatprep.subr.bf16.mxu1 %v5334_v47  ;;  %v5410_v45 = vld [vmem:[%s6729_s6 + $0x80] sm:$0xff]   ;;  %v813_v46 = vpack.c.bf16 %v809_v43, %v809_v43  ;;  %v5411_v47 = vld [vmem:[%s6729_s6 + $0x48] sm:$0xff]  }
 0x153   : > { %1653 = vmatpush1.bf16.msra.mxu0 %v5329_v48  ;;  %1735 = vmatpush1.bf16.msra.mxu1 %v5332_v49  ;;  %v5412_v48 = vld [vmem:[%s6729_s6 + $0xc8] sm:$0xff]  }
 0x154   : > { %1654 = vmatprep.subr.bf16.mxu0 %v5337_v50  ;;  %1736 = vmatprep.subr.bf16.mxu1 %v5340_v51  ;;  %v5413_v49 = vld [vmem:[%s6729_s6 + $0x8] sm:$0xff]   ;;  %v5415_v51 = vld [vmem:[%s6729_s6 + $0x50] sm:$0xff]  }
 0x155   : > { %v5414_v50 = vld [vmem:[%s6729_s6 + $0x88] sm:$0xff]  }
 0x157   : > { %1655 = vmatpush1.bf16.msra.mxu0 %v5335_v52  ;;  %1737 = vmatpush1.bf16.msra.mxu1 %v5338_v53  ;;  %v5416_v52 = vld [vmem:[%s6729_s6 + $0xd0] sm:$0xff]  }
 0x158   : > { %1656 = vmatprep.subr.bf16.mxu0 %v5343_v54  ;;  %1738 = vmatprep.subr.bf16.mxu1 %v5346_v55  ;;  %v5417_v53 = vld [vmem:[%s6729_s6 + $0x10] sm:$0xff]   ;;  %v5419_v55 = vld [vmem:[%s6729_s6 + $0x58] sm:$0xff]  }
 0x159   : > { %v5418_v54 = vld [vmem:[%s6729_s6 + $0x90] sm:$0xff]  }
 0x15b   : > { %1657 = vmatpush1.bf16.msra.mxu0 %v5341_v56  ;;  %1739 = vmatpush1.bf16.msra.mxu1 %v5344_v57  ;;  %v5420_v56 = vld [vmem:[%s6729_s6 + $0xd8] sm:$0xff]  }
 0x15c   : > { %1658 = vmatprep.subr.bf16.mxu0 %v5349_v58  ;;  %1740 = vmatprep.subr.bf16.mxu1 %v5352_v59  ;;  %v5421_v57 = vld [vmem:[%s6729_s6 + $0x18] sm:$0xff]   ;;  %v5423_v59 = vld [vmem:[%s6729_s6 + $0x60] sm:$0xff]  }
 0x15d   : > { %v5422_v58 = vld [vmem:[%s6729_s6 + $0x98] sm:$0xff]  }
 0x15f   : > { %1659 = vmatpush1.bf16.msra.mxu0 %v5347_v60  ;;  %1741 = vmatpush1.bf16.msra.mxu1 %v5350_v61  ;;  %v5424_v60 = vld [vmem:[%s6729_s6 + $0xe0] sm:$0xff]  }
 0x160   : > { %1660 = vmatprep.subr.bf16.mxu0 %v5355_v62  ;;  %1742 = vmatprep.subr.bf16.mxu1 %v5358_v63  ;;  %v5425_v61 = vld [vmem:[%s6729_s6 + $0x20] sm:$0xff]   ;;  %v5427_v63 = vld [vmem:[%s6729_s6 + $0x68] sm:$0xff]  }
 0x161   : > { %v5426_v62 = vld [vmem:[%s6729_s6 + $0xa0] sm:$0xff]  }
 0x163   : > { %1661 = vmatpush1.bf16.msra.mxu0 %v5353_v1  ;;  %1743 = vmatpush1.bf16.msra.mxu1 %v5356_v2  ;;  %v5428_v1 = vld [vmem:[%s6729_s6 + $0xe8] sm:$0xff]  }
 0x164   : > { %1662 = vmatprep.subr.bf16.mxu0 %v5361_v3  ;;  %1744 = vmatprep.subr.bf16.mxu1 %v5364_v4  ;;  %v5429_v2 = vld [vmem:[%s6729_s6 + $0x28] sm:$0xff]   ;;  %v5431_v4 = vld [vmem:[%s6729_s6 + $0x70] sm:$0xff]  }
 0x165   : > { %v5430_v3 = vld [vmem:[%s6729_s6 + $0xa8] sm:$0xff]  }
 0x167   : > { %1663 = vmatpush1.bf16.msra.mxu0 %v5359_v5  ;;  %1745 = vmatpush1.bf16.msra.mxu1 %v5362_v6  ;;  %v5432_v5 = vld [vmem:[%s6729_s6 + $0xf0] sm:$0xff]  }
 0x168   : > { %1664 = vmatprep.subr.bf16.mxu0 %v5367_v7  ;;  %1746 = vmatprep.subr.bf16.mxu1 %v5370_v8  ;;  %v5433_v6 = vld [vmem:[%s6729_s6 + $0x30] sm:$0xff]   ;;  %v5435_v8 = vld [vmem:[%s6729_s6 + $0x78] sm:$0xff]  }
 0x169   : > { %v5434_v7 = vld [vmem:[%s6729_s6 + $0xb0] sm:$0xff]  }
 0x16b   : > { %1665 = vmatpush1.bf16.msra.mxu0 %v5365_v9  ;;  %1747 = vmatpush1.bf16.msra.mxu1 %v5368_v10  ;;  %v5436_v9 = vld [vmem:[%s6729_s6 + $0xf8] sm:$0xff]  }
 0x16c   : > { %1666 = vmatprep.subr.bf16.mxu0 %v5373_v16  ;;  %1748 = vmatprep.subr.bf16.mxu1 %v5376_v17  ;;  %v5437_v10 = vld [vmem:[%s6729_s6 + $0x38] sm:$0xff]   ;;  %v2135_v17 = vld [vmem:[%s671_s19] sm:$0xff]  ;;  %s5842_s19 = smov 112  }
 0x16d   : > { %v5438_v16 = vld [vmem:[%s6729_s6 + $0xb8] sm:$0xff]   ;;  %2137 = vrot.lane.b32.xlu0 %v2135_v17, %s5839_s22 }
 0x16e   : > { %v6275_v17 = vld [vmem:[%s6733_s10 + $0x18] sm:$0xff]  }
 0x16f   : > { %1667 = vmatpush1.bf16.msra.mxu0 %v5371_v18  ;;  %1749 = vmatpush1.bf16.msra.mxu1 %v5374_v19  ;;  %v943_v18 = vld [vmem:[%s6728_s5] sm:$0xf] }
 0x170   : > { %1668 = vmatprep.subr.bf16.mxu0 %v5379_v20  ;;  %1750 = vmatprep.subr.bf16.mxu1 %v5382_v21  ;;  %v948_v19 = vrot.slane %v943_v18, %v6098_v12  ;;  %v956_v20 = vrot.slane %v943_v18, %v6120_v29  ;;  %v952_v21 = vrot.slane %v943_v18, %v6106_v14 }
 0x173   : > { %1669 = vmatpush1.bf16.msra.mxu0 %v5377_v22  ;;  %1751 = vmatpush1.bf16.msra.mxu1 %v5380_v23  ;;  %v960_v22 = vrot.slane %v943_v18, %v6109_v15 }
 0x174   : > { %1670 = vmatprep.subr.bf16.mxu0 %v5385_v25  ;;  %1752 = vmatprep.subr.bf16.mxu1 %v5388_v26 }
 0x177   : > { %1671 = vmatpush1.bf16.msra.mxu0 %v5383_v27  ;;  %1753 = vmatpush1.bf16.msra.mxu1 %v5386_v28 }
 0x178   : > { %1672 = vmatprep.subr.bf16.mxu0 %v5391_v30  ;;  %1754 = vmatprep.subr.bf16.mxu1 %v5394_v31 }
 0x17b   : > { %1673 = vmatpush1.bf16.msra.mxu0 %v5389_v32  ;;  %1755 = vmatpush1.bf16.msra.mxu1 %v5392_v33 }
 0x17c   : > { %1674 = vmatprep.subr.bf16.mxu0 %v5397_v35  ;;  %1756 = vmatprep.subr.bf16.mxu1 %v5400_v36 }
 0x17f   : > { %1675 = vmatpush1.bf16.msra.mxu0 %v5395_v37  ;;  %1757 = vmatpush1.bf16.msra.mxu1 %v5398_v38 }
 0x180   : > { %1676 = vmatprep.subr.bf16.mxu0 %v5403_v39  ;;  %1758 = vmatprep.subr.bf16.mxu1 %v5406_v40 }
 0x183   : > { %1677 = vmatpush1.bf16.msra.mxu0 %v5401_v41  ;;  %1759 = vmatpush1.bf16.msra.mxu1 %v5404_v42 }
 0x184   : > { %4766 = vmatprep.subr.bf16.mxu0 %v5407_v13  ;;  %4788 = vmatprep.subr.bf16.mxu1 %v5408_v44  ;;  %v6237_v13 = vld [vmem:[%s6731_s8] sm:$0xff]   ;;  %v5840_v44 = vmov 0.0  }
 0x186   : > { %1679 = vmatmul.mubr.bf16.vlgmr.msra.gmra.mrb[4].mxu0 %v813_v46  ;;  %1761 = vmatmul.mubr.bf16.vlgmr.msra.gmra.mrb[4].mxu1 %v813_v46  ;;  %v4538_v46 = vld [vmem:[%s6730_s7] ss:$0 sm:$0xff] }
 0x187   : > { %4767 = vmatpush3.bf16.msra.mxu0 %v5409_v24  ;;  %4789 = vmatpush3.bf16.msra.mxu1 %v5410_v45 }
 0x188   : > { %4768 = vmatprep.subr.bf16.mxu0 %v5411_v47  ;;  %4790 = vmatprep.subr.bf16.mxu1 %v5412_v48 }
 0x18b   : > { %4769 = vmatpush3.bf16.msra.mxu0 %v5413_v49  ;;  %4791 = vmatpush3.bf16.msra.mxu1 %v5414_v50 }
 0x18c   : > { %4770 = vmatprep.subr.bf16.mxu0 %v5415_v51  ;;  %4792 = vmatprep.subr.bf16.mxu1 %v5416_v52 }
 0x18f   : > { %4771 = vmatpush3.bf16.msra.mxu0 %v5417_v53  ;;  %4793 = vmatpush3.bf16.msra.mxu1 %v5418_v54 }
 0x190   : > { %4772 = vmatprep.subr.bf16.mxu0 %v5419_v55  ;;  %4794 = vmatprep.subr.bf16.mxu1 %v5420_v56 }
 0x193   : > { %4773 = vmatpush3.bf16.msra.mxu0 %v5421_v57  ;;  %4795 = vmatpush3.bf16.msra.mxu1 %v5422_v58 }
 0x194   : > { %4774 = vmatprep.subr.bf16.mxu0 %v5423_v59  ;;  %4796 = vmatprep.subr.bf16.mxu1 %v5424_v60 }
 0x197   : > { %4775 = vmatpush3.bf16.msra.mxu0 %v5425_v61  ;;  %4797 = vmatpush3.bf16.msra.mxu1 %v5426_v62 }
 0x198   : > { %4776 = vmatprep.subr.bf16.mxu0 %v5427_v63  ;;  %4798 = vmatprep.subr.bf16.mxu1 %v5428_v1 }
 0x19b   : > { %4777 = vmatpush3.bf16.msra.mxu0 %v5429_v2  ;;  %4799 = vmatpush3.bf16.msra.mxu1 %v5430_v3  ;;  %v6254_v2 = vld [vmem:[%s6733_s10] sm:$0xff]  }
 0x19c   : > { %4778 = vmatprep.subr.bf16.mxu0 %v5431_v4  ;;  %4800 = vmatprep.subr.bf16.mxu1 %v5432_v5  ;;  %v6260_v5 = vld [vmem:[%s6733_s10 + $0x8] sm:$0xff]  }
 0x19f   : > { %4779 = vmatpush3.bf16.msra.mxu0 %v5433_v6  ;;  %4801 = vmatpush3.bf16.msra.mxu1 %v5434_v7 }
 0x1a0   : > { %4780 = vmatprep.subr.bf16.mxu0 %v5435_v8  ;;  %4802 = vmatprep.subr.bf16.mxu1 %v5436_v9 }
 0x1a3   : > { %4781 = vmatpush3.bf16.msra.mxu0 %v5437_v10  ;;  %4803 = vmatpush3.bf16.msra.mxu1 %v5438_v16  ;;  %v6267_v10 = vld [vmem:[%s6733_s10 + $0x10] sm:$0xff]  }
 0x1a4   : > { %4934 = vmatprep.subr.bf16.mxu0 %v5840_v44  ;;  %4940 = vmatprep.subr.bf16.mxu1 %v5840_v44 }
 0x1df   : > { %v2138_v7 = vpop.permute.xlu0 %2137 }
 0x259   : > { %v1680_v23 = vpop.f32.mrb[4].mxu0  ;;  %v1762_v25 = vpop.f32.mrb[4].mxu1 }
 0x25a   : > { %v5118_v26 = vadd.f32 %v1680_v23, %v948_v19  ;;  %v5120_v27 = vadd.f32 %v1762_v25, %v956_v20  ;;  %v1682_v28 = vpop.f32.mrb[5].mxu0  ;;  %v1764_v30 = vpop.f32.mrb[5].mxu1  ;;  %v6304_v23 = vld [vmem:[%s6733_s10 + $0x30] sm:$0xff]   ;;  %v6311_v25 = vld [vmem:[%s6733_s10 + $0x38] sm:$0xff]  }
 0x25b   : > { %v5119_v31 = vadd.f32 %v1682_v28, %v952_v21  ;;  %v5121_v32 = vadd.f32 %v1764_v30, %v960_v22  ;;  %v1684_v33 = vpop.f32.mrb[6].mxu0  ;;  %v1766_v34 = vpop.f32.mrb[6].mxu1  ;;  %v6290_v21 = vld [vmem:[%s6733_s10 + $0x20] sm:$0xff]   ;;  %v6297_v22 = vld [vmem:[%s6733_s10 + $0x28] sm:$0xff]   ;;  %v6331_v28 = vld [vmem:[%s6735_s12 + $0x10] sm:$0xff]  }
 0x25c   : > { %v1769_v35 = vmax.f32 %v5118_v26, 0.0  ;;  %v1771_v36 = vmax.f32 %v5120_v27, 0.0  ;;  %v1685_v37 = vpop.f32.mrb[7].mxu0  ;;  %v1767_v38 = vpop.f32.mrb[7].mxu1  ;;  %v6318_v26 = vld [vmem:[%s6735_s12] sm:$0xff]   ;;  %v6324_v27 = vld [vmem:[%s6735_s12 + $0x8] sm:$0xff]  }
 0x25d   : > { %v1770_v11 = vmax.f32 %v5119_v31, 0.0  ;;  %v1772_v39 = vmax.f32 %v5121_v32, 0.0  ;;  %v6338_v30 = vld [vmem:[%s6735_s12 + $0x18] sm:$0xff]   ;;  %v6346_v31 = vld [vmem:[%s6732_s9] ss:$0 sm:$0xff] }
 0x25e   : > { %v1773_v42 = vpack.c.bf16 %v1769_v35, %v1769_v35  ;;  %v1775_v43 = vpack.c.bf16 %v1771_v36, %v1771_v36 }
 0x25f   : > { %v1774_v40 = vpack.c.bf16 %v1770_v11, %v1770_v11  ;;  %v1776_v41 = vpack.c.bf16 %v1772_v39, %v1772_v39  ;;  %v6356_v11 = vld [vmem:[%s6735_s12 + $0x20] sm:$0xff]   ;;  %v6363_v39 = vld [vmem:[%s6735_s12 + $0x28] sm:$0xff]  }
 0x261   : > { %2072 = vmatprep.mubr.bf16.mxu0 %v1774_v40  ;;  %2112 = vmatprep.mubr.bf16.mxu1 %v1776_v41  ;;  %v6370_v40 = vld [vmem:[%s6735_s12 + $0x30] sm:$0xff]   ;;  %v6377_v41 = vld [vmem:[%s6735_s12 + $0x38] sm:$0xff]  }
 0x262   : > { %2073 = vmatmul.mubr.bf16.vlgmr.msra.gmra.mrb[8].mxu0 %v1773_v42  ;;  %2113 = vmatmul.mubr.bf16.vlgmr.msra.gmra.mrb[8].mxu1 %v1775_v43  ;;  %v6384_v42 = vld [vmem:[%s6734_s11] ss:$0 sm:$0xff] }
 0x263   : > { %4935 = vmatpush3.bf16.msra.mxu0 %v6237_v13  ;;  %4936 = vmatprep.mubr.msk.bf16.mxu0 %vm5841_vm1, %v5840_v44 }
 0x264   : > { %4960 = vmatprep.subr.bf16.mxu0 %v5840_v44  ;;  %4956 = vmatprep.mubr.msk.bf16.mxu1 %vm5841_vm1, %v5840_v44 }
 0x265   : > { %4941 = vmatpush3.bf16.msra.mxu1 %v6254_v2 }
 0x266   : > { %4942 = vmatprep.subr.bf16.mxu1 %v5840_v44 }
 0x269   : > { %4943 = vmatpush3.bf16.msra.mxu1 %v6260_v5 }
 0x26a   : > { %4944 = vmatprep.subr.bf16.mxu1 %v5840_v44 }
 0x26d   : > { %4945 = vmatpush3.bf16.msra.mxu1 %v6267_v10 }
 0x26e   : > { %4946 = vmatprep.subr.bf16.mxu1 %v5840_v44 }
 0x271   : > { %4947 = vmatpush3.bf16.msra.mxu1 %v6275_v17 }
 0x272   : > { %4948 = vmatprep.subr.bf16.mxu1 %v5840_v44 }
 0x275   : > { %4949 = vmatpush3.bf16.msra.mxu1 %v6290_v21 }
 0x276   : > { %4950 = vmatprep.subr.bf16.mxu1 %v5840_v44 }
 0x279   : > { %4951 = vmatpush3.bf16.msra.mxu1 %v6297_v22 }
 0x27a   : > { %4952 = vmatprep.subr.bf16.mxu1 %v5840_v44 }
 0x27d   : > { %4953 = vmatpush3.bf16.msra.mxu1 %v6304_v23 }
 0x27e   : > { %4954 = vmatprep.subr.bf16.mxu1 %v5840_v44 }
 0x281   : > { %4955 = vmatpush3.bf16.msra.mxu1 %v6311_v25 }
 0x282   : > { %4980 = vmatprep.subr.bf16.mxu1 %v5840_v44 }
 0x335   : > { %v4782_v24 = vpop.f32.mrb[8].mxu0  ;;  %v4804_v45 = vpop.f32.mrb[8].mxu1 }
 0x336   : > { %v4783_v47 = vpop.f32.mrb[9].mxu0  ;;  %v4805_v48 = vpop.f32.mrb[9].mxu1 }
 0x337   : > { %v4784_v49 = vadd.f32 %v4783_v47, %v4782_v24  ;;  %v4806_v50 = vadd.f32 %v4805_v48, %v4804_v45  ;;  %v4785_v51 = vpop.f32.mrb[10].mxu0  ;;  %v4807_v52 = vpop.f32.mrb[10].mxu1 }
 0x338   : > { %v4786_v53 = vpop.f32.mrb[11].mxu0  ;;  %v4808_v54 = vpop.f32.mrb[11].mxu1 }
 0x339   : > { %v2075_v55 = vadd.f32 %v4784_v49, %v4538_v46 }
 0x33b   : > { %v2115_v56 = vadd.f32 %v4806_v50, %v2075_v55  ;;  %v6408_v50 = vld [vmem:[%s6736_s13] ss:$0 sm:$0xff] }
 0x33d   : > { %v2121_v57 = vmin.f32 %v2115_v56, 20.0  ;;  %4274 = vrot.lane.b32.xlu1 %v2115_v56, %s5839_s22  ;;  %vm2120_vm3 = vcmp.gt.f32.partialorder %v2115_v56, 20.0 }
 0x33f   : > { %v2122_v58 = vmul.f32 1.442695, %v2121_v57 }
 0x341   : > { %5686 = vpow2.f32 %v2122_v58 }
 0x34b   : > { %v5687_v59 = vpop.eup %5686 }
 0x34c   : > { %v2124_v60 = vadd.f32 1.0, %v5687_v59  ;;  %v2127_v61 = vmul.f32 -0.5, %v5687_v59  ;;  %v2130_v63 = vand.u32 2147483647, %v5687_v59 }
 0x34e   : > { %5688 = vlog2.f32 %v2124_v60  ;;  %v2128_v62 = vadd.f32 1.0, %v2127_v61  ;;  %vm2131_vm2 = vcmp.lt.f32.partialorder %v2130_v63, 0.0004427343 }
 0x350   : > { %v2129_v4 = vmul.f32 %v5687_v59, %v2128_v62 }
 0x358   : > { %v5689_v1 = vpop.eup %5688 }
 0x359   : > { %v2126_v3 = vmul.f32 0.6931472, %v5689_v1 }
 0x35b   : > { %v2132_v6 = vsel %vm2131_vm2, %v2129_v4, %v2126_v3 }
 0x35c   : > { %v2133_v8 = vsel %vm2120_vm3, %v2115_v56, %v2132_v6 }
 0x35d   : > { %v2134_v9 = vadd.f32 1e-06, %v2133_v8 }
 0x35f   : > { %v2140_v16 = vmul.f32 %v2138_v7, %v2134_v9  ;;  %4278 = vrot.lane.b32.xlu1 %v2134_v9, %s5839_s22  ;;  %s6790_s22 = sld [smem:[#allocation17_spill]] }
 0x361   : > { %2142 = vrot.lane.b32.xlu0 %v2140_v16, %s5842_s19  ;;  %s5843_s19 = smov [#allocation7]  }
 0x362   : > { %s5766_s25 = sshll.u32 %s5843_s19, 4  ;;  %s5767_s25 = int_to_ptr.vmem [resolvable:$false] %s5766_s25 }
 0x363   : > { %p5769_p4 = scmp.lt.s32.totalorder %s6683_s1, %s5767_s25 }
 0x365   : > { %p6793_p1 = scmp.ne.s32.totalorder %s6790_s22, 0 }
 0x367   : > { %p5764_p2 = pnand %p5763_p12, %p6793_p1 }
 0x369   : > { %p5765_p3 = pneg %p5764_p2 }
 0x3d3   : > { %v2143_v18 = vpop.permute.xlu0 %2142 }
 0x3d4   : > { %v6280_v19 = vadd.f32 %v2143_v18, %v2115_v56 }
 0x3d6   : > { %v2146_v20 = vpack.c.bf16 %v6280_v19, %v6280_v19 }
 0x3d8   : > { %4937 = vmatmul.mubr.msk.bf16.vlgmr.msra.gmra.mrb[12].mxu0 %vm721_vm0, %v2146_v20 }
 0x3d9   : > { %4976 = vmatprep.mubr.msk.bf16.mxu0 %vm5841_vm1, %v5840_v44  ;;  %4961 = vmatpush3.bf16.msra.mxu0 %v6318_v26 }
 0x3da   : > { %4962 = vmatprep.subr.bf16.mxu0 %v5840_v44 }
 0x3dd   : > { %4963 = vmatpush3.bf16.msra.mxu0 %v6324_v27 }
 0x3de   : > { %4964 = vmatprep.subr.bf16.mxu0 %v5840_v44 }
 0x3e1   : > { %4965 = vmatpush3.bf16.msra.mxu0 %v6331_v28 }
 0x3e2   : > { %4966 = vmatprep.subr.bf16.mxu0 %v5840_v44 }
 0x3e5   : > { %4967 = vmatpush3.bf16.msra.mxu0 %v6338_v30 }
 0x3e6   : > { %4968 = vmatprep.subr.bf16.mxu0 %v5840_v44 }
 0x3e9   : > { %4969 = vmatpush3.bf16.msra.mxu0 %v6356_v11 }
 0x3ea   : > { %4970 = vmatprep.subr.bf16.mxu0 %v5840_v44 }
 0x3ed   : > { %4971 = vmatpush3.bf16.msra.mxu0 %v6363_v39 }
 0x3ee   : > { %4972 = vmatprep.subr.bf16.mxu0 %v5840_v44 }
 0x3f1   : > { %4973 = vmatpush3.bf16.msra.mxu0 %v6370_v40 }
 0x3f2   : > { %4974 = vmatprep.subr.bf16.mxu0 %v5840_v44 }
 0x3f5   : > { %4975 = vmatpush3.bf16.msra.mxu0 %v6377_v41 }
 0x3f6   : > { %4986 = vmatprep.subr.bf16.mxu0 %v5840_v44 }
 0x4ab   : > { %v2199_v32 = vpop.f32.mrb[12].mxu0 }
 0x4ac   : > { %v2200_v33 = vadd.f32 %v6346_v31, %v2199_v32  ;;  %v4938_v34 = vpop.f32.mrb[13].mxu0 }
 0x4ad   : > { %v2202_v35 = vpop.f32.mrb[14].mxu0 }
 0x4ae   : > { %5690 = vtanh.f32 %v2200_v33  ;;  %v4939_v36 = vpop.f32.mrb[15].mxu0 }
 0x4b8   : > { %v5691_v37 = vpop.eup %5690 }
 0x4b9   : > { %v2206_v38 = vpack.c.bf16 %v5691_v37, %v5691_v37 }
 0x4bb   : > { %4957 = vmatmul.mubr.bf16.vlgmr.msra.gmra.mrb[12].mxu1 %v2206_v38 }
 0x4bc   : > { %4981 = vmatpush3.bf16.msra.mxu1 %v6237_v13  ;;  %4982 = vmatprep.mubr.msk.bf16.mxu1 %vm5841_vm1, %v5840_v44 }
 0x4bd   : > { %5006 = vmatprep.subr.bf16.mxu1 %v5840_v44 }
 0x58e   : > { %v2312_v43 = vpop.f32.mrb[12].mxu1 }
 0x58f   : > { %v2313_v24 = vadd.f32 %v6384_v42, %v2312_v43  ;;  %v4958_v45 = vpop.f32.mrb[13].mxu1 }
 0x590   : > { %v2315_v46 = vpop.f32.mrb[14].mxu1 }
 0x591   : > { %5692 = vtanh.f32 %v2313_v24  ;;  %v4959_v47 = vpop.f32.mrb[15].mxu1 }
 0x59b   : > { %v5693_v48 = vpop.eup %5692 }
 0x59c   : > { %v2319_v49 = vpack.c.bf16 %v5693_v48, %v5693_v48 }
 0x59e   : > { %4977 = vmatmul.mubr.bf16.vlgmr.msra.gmra.mrb[16].mxu0 %v2319_v49 }
 0x59f   : > { %4987 = vmatpush3.bf16.msra.mxu0 %v6254_v2  ;;  %5002 = vmatprep.mubr.msk.bf16.mxu0 %vm5841_vm1, %v5840_v44 }
 0x5a0   : > { %4988 = vmatprep.subr.bf16.mxu0 %v5840_v44 }
 0x5a3   : > { %4989 = vmatpush3.bf16.msra.mxu0 %v6260_v5 }
 0x5a4   : > { %4990 = vmatprep.subr.bf16.mxu0 %v5840_v44 }
 0x5a7   : > { %4991 = vmatpush3.bf16.msra.mxu0 %v6267_v10 }
 0x5a8   : > { %4992 = vmatprep.subr.bf16.mxu0 %v5840_v44 }
 0x5ab   : > { %4993 = vmatpush3.bf16.msra.mxu0 %v6275_v17 }
 0x5ac   : > { %4994 = vmatprep.subr.bf16.mxu0 %v5840_v44 }
 0x5af   : > { %4995 = vmatpush3.bf16.msra.mxu0 %v6290_v21 }
 0x5b0   : > { %4996 = vmatprep.subr.bf16.mxu0 %v5840_v44 }
 0x5b3   : > { %4997 = vmatpush3.bf16.msra.mxu0 %v6297_v22 }
 0x5b4   : > { %4998 = vmatprep.subr.bf16.mxu0 %v5840_v44 }
 0x5b7   : > { %4999 = vmatpush3.bf16.msra.mxu0 %v6304_v23 }
 0x5b8   : > { %5000 = vmatprep.subr.bf16.mxu0 %v5840_v44 }
 0x5bb   : > { %5001 = vmatpush3.bf16.msra.mxu0 %v6311_v25 }
 0x5bc   : > { %5026 = vmatprep.subr.bf16.mxu0 %v5840_v44 }
 0x671   : > { %v2425_v51 = vpop.f32.mrb[16].mxu0 }
 0x672   : > { %v6411_v52 = vadd.f32 %v6408_v50, %v2425_v51  ;;  %v4978_v53 = vpop.f32.mrb[17].mxu0 }
 0x673   : > { %v2428_v54 = vpop.f32.mrb[18].mxu0 }
 0x674   : > { %v6414_v55 = vmul.f32 0.33333334, %v6411_v52  ;;  %v4979_v56 = vpop.f32.mrb[19].mxu0 }
 0x676   : > { %v2432_v57 = vadd.f32 %v6414_v55, %v6280_v19 }
 0x678   : > { %v2433_v58 = vpack.c.bf16 %v2432_v57, %v2432_v57 }
 0x67a   : > { %4983 = vmatmul.mubr.msk.bf16.vlgmr.msra.gmra.mrb[16].mxu1 %vm721_vm0, %v2433_v58 }
 0x67b   : > { %5007 = vmatpush3.bf16.msra.mxu1 %v6318_v26  ;;  %5022 = vmatprep.mubr.msk.bf16.mxu1 %vm5841_vm1, %v5840_v44 }
 0x67c   : > { %5008 = vmatprep.subr.bf16.mxu1 %v5840_v44 }
 0x67f   : > { %5009 = vmatpush3.bf16.msra.mxu1 %v6324_v27 }
 0x680   : > { %5010 = vmatprep.subr.bf16.mxu1 %v5840_v44 }
 0x683   : > { %5011 = vmatpush3.bf16.msra.mxu1 %v6331_v28 }
 0x684   : > { %5012 = vmatprep.subr.bf16.mxu1 %v5840_v44 }
 0x687   : > { %5013 = vmatpush3.bf16.msra.mxu1 %v6338_v30 }
 0x688   : > { %5014 = vmatprep.subr.bf16.mxu1 %v5840_v44 }
 0x68b   : > { %5015 = vmatpush3.bf16.msra.mxu1 %v6356_v11 }
 0x68c   : > { %5016 = vmatprep.subr.bf16.mxu1 %v5840_v44 }
 0x68f   : > { %5017 = vmatpush3.bf16.msra.mxu1 %v6363_v39 }
 0x690   : > { %5018 = vmatprep.subr.bf16.mxu1 %v5840_v44 }
 0x693   : > { %5019 = vmatpush3.bf16.msra.mxu1 %v6370_v40 }
 0x694   : > { %5020 = vmatprep.subr.bf16.mxu1 %v5840_v44 }
 0x697   : > { %5021 = vmatpush3.bf16.msra.mxu1 %v6377_v41 }
 0x698   : > { %5032 = vmatprep.subr.bf16.mxu1 %v5840_v44 }
 0x74d   : > { %v2471_v59 = vpop.f32.mrb[16].mxu1 }
 0x74e   : > { %v2472_v60 = vadd.f32 %v6346_v31, %v2471_v59  ;;  %v4984_v61 = vpop.f32.mrb[17].mxu1 }
 0x74f   : > { %v2474_v62 = vpop.f32.mrb[18].mxu1 }
 0x750   : > { %5694 = vtanh.f32 %v2472_v60  ;;  %v4985_v63 = vpop.f32.mrb[19].mxu1 }
 0x75a   : > { %v5695_v1 = vpop.eup %5694 }
 0x75b   : > { %v2478_v3 = vpack.c.bf16 %v5695_v1, %v5695_v1  ;;  %v5461_v1 = vld [vmem:[%s6737_s14 + $0xc] ss:$16 sps:$4 sm:$0xff]  }
 0x75d   : > { %5003 = vmatmul.mubr.bf16.vlgmr.msra.gmra.mrb[20].mxu0 %v2478_v3  ;;  %v5459_v3 = vld [vmem:[%s6737_s14 + $0x8] ss:$16 sps:$4 sm:$0xff]  }
 0x75e   : > { %5027 = vmatpush3.bf16.msra.mxu0 %v6237_v13  ;;  %5028 = vmatprep.mubr.msk.bf16.mxu0 %vm5841_vm1, %v5840_v44 }
 0x75f   : > { %5052 = vmatprep.subr.bf16.mxu0 %v5840_v44 }
 0x830   : > { %v2513_v4 = vpop.f32.mrb[20].mxu0 }
 0x831   : > { %v2514_v6 = vadd.f32 %v6384_v42, %v2513_v4  ;;  %v5004_v7 = vpop.f32.mrb[21].mxu0  ;;  %v5467_v4 = vld [vmem:[#allocation5 + $0xc] ss:$16 sps:$4 sm:$0xff]  }
 0x832   : > { %v2516_v8 = vpop.f32.mrb[22].mxu0 }
 0x833   : > { %5696 = vtanh.f32 %v2514_v6  ;;  %v5005_v9 = vpop.f32.mrb[23].mxu0 }
 0x83d   : > { %v5697_v16 = vpop.eup %5696 }
 0x83e   : > { %v2520_v18 = vpack.c.bf16 %v5697_v16, %v5697_v16 }
 0x840   : > { %5023 = vmatmul.mubr.bf16.vlgmr.msra.gmra.mrb[20].mxu1 %v2520_v18 }
 0x841   : > { %5033 = vmatpush3.bf16.msra.mxu1 %v6254_v2  ;;  %5048 = vmatprep.mubr.msk.bf16.mxu1 %vm5841_vm1, %v5840_v44 }
 0x842   : > { %5034 = vmatprep.subr.bf16.mxu1 %v5840_v44 }
 0x845   : > { %5035 = vmatpush3.bf16.msra.mxu1 %v6260_v5 }
 0x846   : > { %5036 = vmatprep.subr.bf16.mxu1 %v5840_v44 }
 0x849   : > { %5037 = vmatpush3.bf16.msra.mxu1 %v6267_v10 }
 0x84a   : > { %5038 = vmatprep.subr.bf16.mxu1 %v5840_v44 }
 0x84d   : > { %5039 = vmatpush3.bf16.msra.mxu1 %v6275_v17 }
 0x84e   : > { %5040 = vmatprep.subr.bf16.mxu1 %v5840_v44 }
 0x851   : > { %5041 = vmatpush3.bf16.msra.mxu1 %v6290_v21 }
 0x852   : > { %5042 = vmatprep.subr.bf16.mxu1 %v5840_v44 }
 0x855   : > { %5043 = vmatpush3.bf16.msra.mxu1 %v6297_v22 }
 0x856   : > { %5044 = vmatprep.subr.bf16.mxu1 %v5840_v44 }
 0x859   : > { %5045 = vmatpush3.bf16.msra.mxu1 %v6304_v23 }
 0x85a   : > { %5046 = vmatprep.subr.bf16.mxu1 %v5840_v44 }
 0x85d   : > { %5047 = vmatpush3.bf16.msra.mxu1 %v6311_v25 }
 0x85e   : > { %5072 = vmatprep.subr.bf16.mxu1 %v5840_v44 }
 0x913   : > { %v2555_v20 = vpop.f32.mrb[20].mxu1 }
 0x914   : > { %v6462_v32 = vadd.f32 %v6408_v50, %v2555_v20  ;;  %v5024_v33 = vpop.f32.mrb[21].mxu1 }
 0x915   : > { %v2558_v34 = vpop.f32.mrb[22].mxu1 }
 0x916   : > { %v2561_v35 = vsub.f32 %v6462_v32, %v6414_v55  ;;  %v5025_v36 = vpop.f32.mrb[23].mxu1 }
 0x918   : > { %v2562_v37 = vadd.f32 %v2561_v35, %v6280_v19 }
 0x91a   : > { %v2563_v38 = vpack.c.bf16 %v2562_v37, %v2562_v37  ;;  %v5462_v37 = vld [vmem:[#allocation5] ss:$16 sps:$4 sm:$0xff]  }
 0x91c   : > { %5029 = vmatmul.mubr.msk.bf16.vlgmr.msra.gmra.mrb[24].mxu0 %vm721_vm0, %v2563_v38  ;;  %v5465_v38 = vld [vmem:[#allocation5 + $0x8] ss:$16 sps:$4 sm:$0xff]  }
 0x91d   : > { %5053 = vmatpush3.bf16.msra.mxu0 %v6318_v26  ;;  %5068 = vmatprep.mubr.msk.bf16.mxu0 %vm5841_vm1, %v5840_v44 }
 0x91e   : > { %5054 = vmatprep.subr.bf16.mxu0 %v5840_v44 }
 0x921   : > { %5055 = vmatpush3.bf16.msra.mxu0 %v6324_v27 }
 0x922   : > { %5056 = vmatprep.subr.bf16.mxu0 %v5840_v44 }
 0x925   : > { %5057 = vmatpush3.bf16.msra.mxu0 %v6331_v28 }
 0x926   : > { %5058 = vmatprep.subr.bf16.mxu0 %v5840_v44 }
 0x929   : > { %5059 = vmatpush3.bf16.msra.mxu0 %v6338_v30 }
 0x92a   : > { %5060 = vmatprep.subr.bf16.mxu0 %v5840_v44 }
 0x92d   : > { %5061 = vmatpush3.bf16.msra.mxu0 %v6356_v11 }
 0x92e   : > { %5062 = vmatprep.subr.bf16.mxu0 %v5840_v44 }
 0x931   : > { %5063 = vmatpush3.bf16.msra.mxu0 %v6363_v39 }
 0x932   : > { %5064 = vmatprep.subr.bf16.mxu0 %v5840_v44 }
 0x935   : > { %5065 = vmatpush3.bf16.msra.mxu0 %v6370_v40 }
 0x936   : > { %5066 = vmatprep.subr.bf16.mxu0 %v5840_v44 }
 0x939   : > { %5067 = vmatpush3.bf16.msra.mxu0 %v6377_v41 }
 0x93a   : > { %5078 = vmatprep.subr.bf16.mxu0 %v5840_v44 }
 0x9ef   : > { %v2601_v43 = vpop.f32.mrb[24].mxu0 }
 0x9f0   : > { %v2602_v24 = vadd.f32 %v6346_v31, %v2601_v43  ;;  %v5030_v45 = vpop.f32.mrb[25].mxu0 }
 0x9f1   : > { %v2604_v46 = vpop.f32.mrb[26].mxu0  ;;  %v5473_v45 = vld [vmem:[#allocation5 + $0x2c] ss:$16 sps:$4 sm:$0xff]  }
 0x9f2   : > { %5698 = vtanh.f32 %v2602_v24  ;;  %v5031_v47 = vpop.f32.mrb[27].mxu0  ;;  %v5470_v24 = vld [vmem:[#allocation5 + $0x24] ss:$16 sps:$4 sm:$0xff]   ;;  %v5479_v46 = vld [vmem:[#allocation5 + $0x4c] ss:$16 sps:$4 sm:$0xff]  }
 0x9f3   : > { %v5477_v47 = vld [vmem:[#allocation5 + $0x48] ss:$16 sps:$4 sm:$0xff]  }
 0x9fc   : > { %v5699_v48 = vpop.eup %5698 }
 0x9fd   : > { %v2608_v49 = vpack.c.bf16 %v5699_v48, %v5699_v48  ;;  %v5482_v48 = vld [vmem:[#allocation5 + $0x64] ss:$16 sps:$4 sm:$0xff]  }
 0x9ff   : > { %5049 = vmatmul.mubr.bf16.vlgmr.msra.gmra.mrb[24].mxu1 %v2608_v49  ;;  %v5485_v49 = vld [vmem:[#allocation5 + $0x6c] ss:$16 sps:$4 sm:$0xff]  }
 0xa00   : > { %5073 = vmatpush3.bf16.msra.mxu1 %v6237_v13  ;;  %5074 = vmatprep.mubr.msk.bf16.mxu1 %vm5841_vm1, %v5840_v44 }
 0xa01   : > { %5098 = vmatprep.subr.bf16.mxu1 %v5840_v44 }
 0xad2   : > { %v2643_v51 = vpop.f32.mrb[24].mxu1 }
 0xad3   : > { %v2644_v53 = vadd.f32 %v6384_v42, %v2643_v51  ;;  %v5050_v54 = vpop.f32.mrb[25].mxu1  ;;  %v5480_v51 = vld [vmem:[#allocation5 + $0x60] ss:$16 sps:$4 sm:$0xff]  }
 0xad4   : > { %v2646_v55 = vpop.f32.mrb[26].mxu1  ;;  %v5488_v54 = vld [vmem:[#allocation5 + $0x84] ss:$16 sps:$4 sm:$0xff]  }
 0xad5   : > { %5700 = vtanh.f32 %v2644_v53  ;;  %v5051_v56 = vpop.f32.mrb[27].mxu1  ;;  %v5483_v53 = vld [vmem:[#allocation5 + $0x68] ss:$16 sps:$4 sm:$0xff]   ;;  %v5491_v55 = vld [vmem:[#allocation5 + $0x8c] ss:$16 sps:$4 sm:$0xff]  }
 0xad6   : > { %v5486_v56 = vld [vmem:[#allocation5 + $0x80] ss:$16 sps:$4 sm:$0xff]  }
 0xadf   : > { %v5701_v57 = vpop.eup %5700 }
 0xae0   : > { %v2650_v58 = vpack.c.bf16 %v5701_v57, %v5701_v57  ;;  %v5489_v57 = vld [vmem:[#allocation5 + $0x88] ss:$16 sps:$4 sm:$0xff]  }
 0xae2   : > { %5069 = vmatmul.mubr.bf16.vlgmr.msra.gmra.mrb[28].mxu0 %v2650_v58  ;;  %v5494_v58 = vld [vmem:[#allocation5 + $0xa4] ss:$16 sps:$4 sm:$0xff]  }
 0xae3   : > { %5079 = vmatpush3.bf16.msra.mxu0 %v6254_v2  ;;  %5094 = vmatprep.mubr.msk.bf16.mxu0 %vm5841_vm1, %v5840_v44 }
 0xae4   : > { %5080 = vmatprep.subr.bf16.mxu0 %v5840_v44 }
 0xae7   : > { %5081 = vmatpush3.bf16.msra.mxu0 %v6260_v5  ;;  %v2691_v5 = vsub.f32 %v6411_v52, %v6462_v32 }
 0xae8   : > { %5082 = vmatprep.subr.bf16.mxu0 %v5840_v44 }
 0xaeb   : > { %5083 = vmatpush3.bf16.msra.mxu0 %v6267_v10 }
 0xaec   : > { %5084 = vmatprep.subr.bf16.mxu0 %v5840_v44 }
 0xaef   : > { %5085 = vmatpush3.bf16.msra.mxu0 %v6275_v17 }
 0xaf0   : > { %5086 = vmatprep.subr.bf16.mxu0 %v5840_v44 }
 0xaf3   : > { %5087 = vmatpush3.bf16.msra.mxu0 %v6290_v21 }
 0xaf4   : > { %5088 = vmatprep.subr.bf16.mxu0 %v5840_v44 }
 0xaf7   : > { %5089 = vmatpush3.bf16.msra.mxu0 %v6297_v22 }
 0xaf8   : > { %5090 = vmatprep.subr.bf16.mxu0 %v5840_v44 }
 0xafb   : > { %5091 = vmatpush3.bf16.msra.mxu0 %v6304_v23 }
 0xafc   : > { %5092 = vmatprep.subr.bf16.mxu0 %v5840_v44 }
 0xaff   : > { %5093 = vmatpush3.bf16.msra.mxu0 %v6311_v25 }
 0xbb5   : > { %v2685_v13 = vpop.f32.mrb[28].mxu0 }
 0xbb6   : > { %v2686_v2 = vadd.f32 %v6408_v50, %v2685_v13  ;;  %v5070_v10 = vpop.f32.mrb[29].mxu0  ;;  %v5497_v13 = vld [vmem:[#allocation5 + $0xac] ss:$16 sps:$4 sm:$0xff]  }
 0xbb7   : > { %v2688_v17 = vpop.f32.mrb[30].mxu0  ;;  %v5500_v10 = vld [vmem:[#allocation5 + $0xc4] ss:$16 sps:$4 sm:$0xff]  }
 0xbb8   : > { %v2692_v21 = vadd.f32 %v2691_v5, %v2686_v2  ;;  %v5071_v59 = vpop.f32.mrb[31].mxu0  ;;  %v2822_v6 = vadd.f32 %v2686_v2, %v6462_v32  ;;  %v5476_v32 = vld [vmem:[#allocation5 + $0x44] ss:$16 sps:$4 sm:$0xff]   ;;  %v5492_v2 = vld [vmem:[#allocation5 + $0xa0] ss:$16 sps:$4 sm:$0xff]  }
 0xbb9   : > { %v5495_v5 = vld [vmem:[#allocation5 + $0xa8] ss:$16 sps:$4 sm:$0xff]   ;;  %v5503_v17 = vld [vmem:[#allocation5 + $0xcc] ss:$16 sps:$4 sm:$0xff]  }
 0xbba   : > { %v2693_v22 = vadd.f32 %v2692_v21, %v6280_v19  ;;  %v2823_v7 = vmul.f32 3.0, %v2822_v6  ;;  %v5498_v21 = vld [vmem:[#allocation5 + $0xc0] ss:$16 sps:$4 sm:$0xff]   ;;  %v5501_v59 = vld [vmem:[#allocation5 + $0xc8] ss:$16 sps:$4 sm:$0xff]  }
 0xbbb   : > { %v5534_v6 = vld [vmem:[#allocation5 + $0x180] ss:$16 sps:$4 sm:$0xff]  }
 0xbbc   : > { %v2694_v60 = vpack.c.bf16 %v2693_v22, %v2693_v22  ;;  %v2824_v16 = vadd.f32 %v2823_v7, %v6411_v52  ;;  %v5471_v52 = vld [vmem:[#allocation5 + $0x28] ss:$16 sps:$4 sm:$0xff]   ;;  %v5506_v22 = vld [vmem:[#allocation5 + $0xe4] ss:$16 sps:$4 sm:$0xff]  }
 0xbbd   : > { %v5537_v7 = vld [vmem:[#allocation5 + $0x188] ss:$16 sps:$4 sm:$0xff]  }
 0xbbe   : > { %5075 = vmatmul.mubr.msk.bf16.vlgmr.msra.gmra.mrb[28].mxu1 %vm721_vm0, %v2694_v60  ;;  %v5509_v60 = vld [vmem:[#allocation5 + $0xec] ss:$16 sps:$4 sm:$0xff]  }
 0xbbf   : > { %5099 = vmatpush3.bf16.msra.mxu1 %v6318_v26  ;;  %5114 = vmatprep.mubr.msk.bf16.mxu1 %vm5841_vm1, %v5840_v44 }
 0xbc0   : > { %5100 = vmatprep.subr.bf16.mxu1 %v5840_v44 }
 0xbc3   : > { %5101 = vmatpush3.bf16.msra.mxu1 %v6324_v27 }
 0xbc4   : > { %5102 = vmatprep.subr.bf16.mxu1 %v5840_v44 }
 0xbc7   : > { %5103 = vmatpush3.bf16.msra.mxu1 %v6331_v28 }
 0xbc8   : > { %5104 = vmatprep.subr.bf16.mxu1 %v5840_v44 }
 0xbcb   : > { %5105 = vmatpush3.bf16.msra.mxu1 %v6338_v30 }
 0xbcc   : > { %5106 = vmatprep.subr.bf16.mxu1 %v5840_v44 }
 0xbcf   : > { %5107 = vmatpush3.bf16.msra.mxu1 %v6356_v11 }
 0xbd0   : > { %5108 = vmatprep.subr.bf16.mxu1 %v5840_v44 }
 0xbd3   : > { %5109 = vmatpush3.bf16.msra.mxu1 %v6363_v39 }
 0xbd4   : > { %5110 = vmatprep.subr.bf16.mxu1 %v5840_v44 }
 0xbd7   : > { %5111 = vmatpush3.bf16.msra.mxu1 %v6370_v40 }
 0xbd8   : > { %5112 = vmatprep.subr.bf16.mxu1 %v5840_v44 }
 0xbdb   : > { %5113 = vmatpush3.bf16.msra.mxu1 %v6377_v41 }
 0xbdc   : > { %2919 = vmatprep.subr.bf16.mxu1 %v5461_v1  ;;  %v5533_v1 = vld [vmem:[#allocation5 + $0x16c] ss:$16 sps:$4 sm:$0xff]  }
 0xc91   : > { %v2732_v23 = vpop.f32.mrb[28].mxu1 }
 0xc92   : > { %v2733_v25 = vadd.f32 %v6346_v31, %v2732_v23  ;;  %v5076_v26 = vpop.f32.mrb[29].mxu1  ;;  %v5458_v31 = vld [vmem:[%s6737_s14 + $0x4] ss:$16 sps:$4 sm:$0xff]   ;;  %v5504_v23 = vld [vmem:[#allocation5 + $0xe0] ss:$16 sps:$4 sm:$0xff]  }
 0xc93   : > { %v2735_v27 = vpop.f32.mrb[30].mxu1  ;;  %2878 = vmatprep.subr.bf16.mxu0 %v5458_v31  ;;  %v5512_v26 = vld [vmem:[#allocation5 + $0x104] ss:$16 sps:$4 sm:$0xff]  }
 0xc94   : > { %5702 = vtanh.f32 %v2733_v25  ;;  %v5077_v28 = vpop.f32.mrb[31].mxu1  ;;  %v5507_v25 = vld [vmem:[#allocation5 + $0xe8] ss:$16 sps:$4 sm:$0xff]   ;;  %v5515_v27 = vld [vmem:[#allocation5 + $0x10c] ss:$16 sps:$4 sm:$0xff]  }
 0xc95   : > { %v5510_v28 = vld [vmem:[#allocation5 + $0x100] ss:$16 sps:$4 sm:$0xff]   ;;  %v5530_v31 = vld [vmem:[#allocation5 + $0x164] ss:$16 sps:$4 sm:$0xff]  }
 0xc9e   : > { %v5703_v30 = vpop.eup %5702 }
 0xc9f   : > { %v2739_v11 = vpack.c.bf16 %v5703_v30, %v5703_v30  ;;  %v5513_v30 = vld [vmem:[#allocation5 + $0x108] ss:$16 sps:$4 sm:$0xff]  }
 0xca1   : > { %5095 = vmatmul.mubr.bf16.vlgmr.msra.gmra.mrb[32].mxu0 %v2739_v11  ;;  %v5518_v11 = vld [vmem:[#allocation5 + $0x124] ss:$16 sps:$4 sm:$0xff]  }
 0xca2   : > { %2910 = vmatprep.mubr.bf16.mxu0 %v5838_v0 }
 0xd74   : > { %v2774_v39 = vpop.f32.mrb[32].mxu0 }
 0xd75   : > { %v2775_v61 = vadd.f32 %v6384_v42, %v2774_v39  ;;  %v5096_v40 = vpop.f32.mrb[33].mxu0  ;;  %v5456_v42 = vld [vmem:[%s6737_s14] ss:$16 sps:$4 sm:$0xff]   ;;  %v5521_v39 = vld [vmem:[#allocation5 + $0x12c] ss:$16 sps:$4 sm:$0xff]  }
 0xd76   : > { %v2777_v62 = vpop.f32.mrb[34].mxu0  ;;  %2879 = vmatpush1.bf16.msra.mxu0 %v5456_v42  ;;  %v5519_v40 = vld [vmem:[#allocation5 + $0x128] ss:$16 sps:$4 sm:$0xff]   ;;  %v5528_v42 = vld [vmem:[#allocation5 + $0x160] ss:$16 sps:$4 sm:$0xff]  }
 0xd77   : > { %5704 = vtanh.f32 %v2775_v61  ;;  %v5097_v44 = vpop.f32.mrb[35].mxu0  ;;  %v5516_v61 = vld [vmem:[#allocation5 + $0x120] ss:$16 sps:$4 sm:$0xff]   ;;  %v5524_v62 = vld [vmem:[#allocation5 + $0x144] ss:$16 sps:$4 sm:$0xff]  }
 0xd78   : > { %v5527_v44 = vld [vmem:[#allocation5 + $0x14c] ss:$16 sps:$4 sm:$0xff]  }
 0xd81   : > { %v5705_v41 = vpop.eup %5704 }
 0xd82   : > { %v2781_v63 = vpack.c.bf16 %v5705_v41, %v5705_v41  ;;  %v5522_v41 = vld [vmem:[#allocation5 + $0x140] ss:$16 sps:$4 sm:$0xff]  }
 0xd84   : > { %5115 = vmatmul.mubr.bf16.vlgmr.msra.gmra.mrb[32].mxu1 %v2781_v63  ;;  %v5525_v63 = vld [vmem:[#allocation5 + $0x148] ss:$16 sps:$4 sm:$0xff]  }
 0xd85   : > { %2951 = vmatprep.mubr.bf16.mxu1 %v5838_v0  ;;  %2920 = vmatpush1.bf16.msra.mxu1 %v5459_v3  ;;  %v5464_v0 = vld [vmem:[#allocation5 + $0x4] ss:$16 sps:$4 sm:$0xff]   ;;  %v5531_v3 = vld [vmem:[#allocation5 + $0x168] ss:$16 sps:$4 sm:$0xff]  }
 0xd86   : > { %3758 = vmatprep.subr.bf16.mxu0 %v5464_v0  ;;  %3840 = vmatprep.subr.bf16.mxu1 %v5467_v4  ;;  %v5536_v0 = vld [vmem:[#allocation5 + $0x184] ss:$16 sps:$4 sm:$0xff]   ;;  %v5539_v4 = vld [vmem:[#allocation5 + $0x18c] ss:$16 sps:$4 sm:$0xff]  }
 0xe57   : > { %v2816_v8 = vpop.f32.mrb[32].mxu1 }
 0xe58   : > { %v2817_v9 = vadd.f32 %v6408_v50, %v2816_v8  ;;  %v5116_v18 = vpop.f32.mrb[33].mxu1  ;;  %v5468_v50 = vld [vmem:[#allocation5 + $0x20] ss:$16 sps:$4 sm:$0xff]   ;;  %v5542_v8 = vld [vmem:[#allocation5 + $0x1a4] ss:$16 sps:$4 sm:$0xff]  }
 0xe59   : > { %v2819_v20 = vpop.f32.mrb[34].mxu1  ;;  %v5543_v18 = vld [vmem:[#allocation5 + $0x1a8] ss:$16 sps:$4 sm:$0xff]  }
 0xe5a   : > { %v2825_v33 = vadd.f32 %v2824_v16, %v2817_v9  ;;  %v5117_v34 = vpop.f32.mrb[35].mxu1  ;;  %v5545_v9 = vld [vmem:[#allocation5 + $0x1ac] ss:$16 sps:$4 sm:$0xff]   ;;  %v5540_v16 = vld [vmem:[#allocation5 + $0x1a0] ss:$16 sps:$4 sm:$0xff]  }
 0xe5b   : > { %v5548_v20 = vld [vmem:[#allocation5 + $0x1c4] ss:$16 sps:$4 sm:$0xff]   ;;  %v5546_v34 = vld [vmem:[#allocation5 + $0x1c0] ss:$16 sps:$4 sm:$0xff]  }
 0xe5c   : > { %v2826_v35 = vmul.f32 0.125, %v2825_v33  ;;  %v5551_v33 = vld [vmem:[#allocation5 + $0x1cc] ss:$16 sps:$4 sm:$0xff]  }
 0xe5e   : > { %v2827_v36 = vadd.f32 %v2826_v35, %v6280_v19  ;;  %v5474_v19 = vld [vmem:[#allocation5 + $0x40] ss:$16 sps:$4 sm:$0xff]   ;;  %v5549_v35 = vld [vmem:[#allocation5 + $0x1c8] ss:$16 sps:$4 sm:$0xff]  }
 0xe60   : > { %v2828_v43 = vpack.c.bf16 %v2827_v36, %v2827_v36  ;;  %v5554_v36 = vld [vmem:[#allocation5 + $0x1e4] ss:$16 sps:$4 sm:$0xff]  }
 0xe62   : > { %4599 = vmatmul.mubr.msk.bf16.vlgmr.msra.gmra.mrb[36].mxu0 %vm721_vm0, %v2828_v43  ;;  %4600 = vmatmul.mubr.msk.bf16.vlgmr.msra.gmra.mrb[36].mxu1 %vm721_vm0, %v2828_v43  ;;  %v5555_v43 = vld [vmem:[#allocation5 + $0x1e8] ss:$16 sps:$4 sm:$0xff]  }
 0xe63   : > { %3759 = vmatpush1.bf16.msra.mxu0 %v5462_v37  ;;  %3841 = vmatpush1.bf16.msra.mxu1 %v5465_v38  ;;  %v5557_v37 = vld [vmem:[#allocation5 + $0x1ec] ss:$16 sps:$4 sm:$0xff]   ;;  %v5552_v38 = vld [vmem:[#allocation5 + $0x1e0] ss:$16 sps:$4 sm:$0xff]  }
 0xe64   : > { %3760 = vmatprep.subr.bf16.mxu0 %v5470_v24  ;;  %3842 = vmatprep.subr.bf16.mxu1 %v5473_v45  ;;  %v5560_v24 = vld [vmem:[#allocation5 + $0x204] ss:$16 sps:$4 sm:$0xff]   ;;  %v5563_v45 = vld [vmem:[#allocation5 + $0x20c] ss:$16 sps:$4 sm:$0xff]  }
 0xe67   : > { %3761 = vmatpush1.bf16.msra.mxu0 %v5468_v50  ;;  %3843 = vmatpush1.bf16.msra.mxu1 %v5471_v52  ;;  %v6556_v50 = vld [vmem:[%s6738_s15] sm:$0xf] }
 0xe68   : > { %3762 = vmatprep.subr.bf16.mxu0 %v5476_v32  ;;  %3844 = vmatprep.subr.bf16.mxu1 %v5479_v46  ;;  %v2838_v52 = vrot.slane %v6556_v50, %v6098_v12  ;;  %v2842_v32 = vrot.slane %v6556_v50, %v6106_v14  ;;  %v2850_v46 = vrot.slane %v6556_v50, %v6109_v15 }
 0xe6b   : > { %3763 = vmatpush1.bf16.msra.mxu0 %v5474_v19  ;;  %3845 = vmatpush1.bf16.msra.mxu1 %v5477_v47 }
 0xe6c   : > { %3764 = vmatprep.subr.bf16.mxu0 %v5482_v48  ;;  %3846 = vmatprep.subr.bf16.mxu1 %v5485_v49 }
 0xe6f   : > { %3765 = vmatpush1.bf16.msra.mxu0 %v5480_v51  ;;  %3847 = vmatpush1.bf16.msra.mxu1 %v5483_v53 }
 0xe70   : > { %3766 = vmatprep.subr.bf16.mxu0 %v5488_v54  ;;  %3848 = vmatprep.subr.bf16.mxu1 %v5491_v55 }
 0xe73   : > { %3767 = vmatpush1.bf16.msra.mxu0 %v5486_v56  ;;  %3849 = vmatpush1.bf16.msra.mxu1 %v5489_v57 }
 0xe74   : > { %3768 = vmatprep.subr.bf16.mxu0 %v5494_v58  ;;  %3850 = vmatprep.subr.bf16.mxu1 %v5497_v13 }
 0xe77   : > { %3769 = vmatpush1.bf16.msra.mxu0 %v5492_v2  ;;  %3851 = vmatpush1.bf16.msra.mxu1 %v5495_v5 }
 0xe78   : > { %3770 = vmatprep.subr.bf16.mxu0 %v5500_v10  ;;  %3852 = vmatprep.subr.bf16.mxu1 %v5503_v17  ;;  %v5558_v17 = vld [vmem:[#allocation5 + $0x200] ss:$16 sps:$4 sm:$0xff]  }
 0xe7b   : > { %3771 = vmatpush1.bf16.msra.mxu0 %v5498_v21  ;;  %3853 = vmatpush1.bf16.msra.mxu1 %v5501_v59  ;;  %v5561_v21 = vld [vmem:[#allocation5 + $0x208] ss:$16 sps:$4 sm:$0xff]  }
 0xe7c   : > { %3772 = vmatprep.subr.bf16.mxu0 %v5506_v22  ;;  %3854 = vmatprep.subr.bf16.mxu1 %v5509_v60  ;;  %v5566_v22 = vld [vmem:[#allocation5 + $0x224] ss:$16 sps:$4 sm:$0xff]   ;;  %v5569_v60 = vld [vmem:[#allocation5 + $0x22c] ss:$16 sps:$4 sm:$0xff]  }
 0xe7f   : > { %3773 = vmatpush1.bf16.msra.mxu0 %v5504_v23  ;;  %3855 = vmatpush1.bf16.msra.mxu1 %v5507_v25  ;;  %v5564_v25 = vld [vmem:[#allocation5 + $0x220] ss:$16 sps:$4 sm:$0xff]  }
 0xe80   : > { %3774 = vmatprep.subr.bf16.mxu0 %v5512_v26  ;;  %3856 = vmatprep.subr.bf16.mxu1 %v5515_v27  ;;  %v5567_v26 = vld [vmem:[#allocation5 + $0x228] ss:$16 sps:$4 sm:$0xff]   ;;  %v5572_v27 = vld [vmem:[#allocation5 + $0x244] ss:$16 sps:$4 sm:$0xff]  }
 0xe83   : > { %3775 = vmatpush1.bf16.msra.mxu0 %v5510_v28  ;;  %3857 = vmatpush1.bf16.msra.mxu1 %v5513_v30  ;;  %v5575_v28 = vld [vmem:[#allocation5 + $0x24c] ss:$16 sps:$4 sm:$0xff]   ;;  %v5570_v30 = vld [vmem:[#allocation5 + $0x240] ss:$16 sps:$4 sm:$0xff]  }
 0xe84   : > { %3776 = vmatprep.subr.bf16.mxu0 %v5518_v11  ;;  %3858 = vmatprep.subr.bf16.mxu1 %v5521_v39  ;;  %v5573_v11 = vld [vmem:[#allocation5 + $0x248] ss:$16 sps:$4 sm:$0xff]   ;;  %v5578_v39 = vld [vmem:[#allocation5 + $0x264] ss:$16 sps:$4 sm:$0xff]  }
 0xe87   : > { %3777 = vmatpush1.bf16.msra.mxu0 %v5516_v61  ;;  %3859 = vmatpush1.bf16.msra.mxu1 %v5519_v40  ;;  %v5581_v61 = vld [vmem:[#allocation5 + $0x26c] ss:$16 sps:$4 sm:$0xff]   ;;  %v5576_v40 = vld [vmem:[#allocation5 + $0x260] ss:$16 sps:$4 sm:$0xff]  }
 0xe88   : > { %3778 = vmatprep.subr.bf16.mxu0 %v5524_v62  ;;  %3860 = vmatprep.subr.bf16.mxu1 %v5527_v44  ;;  %v5579_v62 = vld [vmem:[#allocation5 + $0x268] ss:$16 sps:$4 sm:$0xff]   ;;  %v5584_v44 = vld [vmem:[#allocation5 + $0x284] ss:$16 sps:$4 sm:$0xff]  }
 0xe8b   : > { %3779 = vmatpush1.bf16.msra.mxu0 %v5522_v41  ;;  %3861 = vmatpush1.bf16.msra.mxu1 %v5525_v63  ;;  %v5587_v41 = vld [vmem:[#allocation5 + $0x28c] ss:$16 sps:$4 sm:$0xff]   ;;  %v5582_v63 = vld [vmem:[#allocation5 + $0x280] ss:$16 sps:$4 sm:$0xff]  }
 0xe8c   : > { %3780 = vmatprep.subr.bf16.mxu0 %v5530_v31  ;;  %3862 = vmatprep.subr.bf16.mxu1 %v5533_v1  ;;  %v5585_v31 = vld [vmem:[#allocation5 + $0x288] ss:$16 sps:$4 sm:$0xff]   ;;  %v5590_v1 = vld [vmem:[#allocation5 + $0x2a4] ss:$16 sps:$4 sm:$0xff]  }
 0xe8f   : > { %3781 = vmatpush1.bf16.msra.mxu0 %v5528_v42  ;;  %3863 = vmatpush1.bf16.msra.mxu1 %v5531_v3  ;;  %v5593_v42 = vld [vmem:[#allocation5 + $0x2ac] ss:$16 sps:$4 sm:$0xff]   ;;  %v5588_v3 = vld [vmem:[#allocation5 + $0x2a0] ss:$16 sps:$4 sm:$0xff]  }
 0xe90   : > { %3782 = vmatprep.subr.bf16.mxu0 %v5536_v0  ;;  %3864 = vmatprep.subr.bf16.mxu1 %v5539_v4  ;;  %v5591_v0 = vld [vmem:[#allocation5 + $0x2a8] ss:$16 sps:$4 sm:$0xff]   ;;  %v5596_v4 = vld [vmem:[#allocation5 + $0x2c4] ss:$16 sps:$4 sm:$0xff]  }
 0xe93   : > { %3783 = vmatpush1.bf16.msra.mxu0 %v5534_v6  ;;  %3865 = vmatpush1.bf16.msra.mxu1 %v5537_v7  ;;  %v5599_v6 = vld [vmem:[#allocation5 + $0x2cc] ss:$16 sps:$4 sm:$0xff]   ;;  %v5594_v7 = vld [vmem:[#allocation5 + $0x2c0] ss:$16 sps:$4 sm:$0xff]  }
 0xe94   : > { %3784 = vmatprep.subr.bf16.mxu0 %v5542_v8  ;;  %3866 = vmatprep.subr.bf16.mxu1 %v5545_v9  ;;  %v5597_v8 = vld [vmem:[#allocation5 + $0x2c8] ss:$16 sps:$4 sm:$0xff]   ;;  %v5602_v9 = vld [vmem:[#allocation5 + $0x2e4] ss:$16 sps:$4 sm:$0xff]  }
 0xe97   : > { %3785 = vmatpush1.bf16.msra.mxu0 %v5540_v16  ;;  %3867 = vmatpush1.bf16.msra.mxu1 %v5543_v18  ;;  %v5605_v16 = vld [vmem:[#allocation5 + $0x2ec] ss:$16 sps:$4 sm:$0xff]   ;;  %v5600_v18 = vld [vmem:[#allocation5 + $0x2e0] ss:$16 sps:$4 sm:$0xff]  }
 0xe98   : > { %3786 = vmatprep.subr.bf16.mxu0 %v5548_v20  ;;  %3868 = vmatprep.subr.bf16.mxu1 %v5551_v33  ;;  %v5603_v20 = vld [vmem:[#allocation5 + $0x2e8] ss:$16 sps:$4 sm:$0xff]   ;;  %v5608_v33 = vld [vmem:[#allocation5 + $0x304] ss:$16 sps:$4 sm:$0xff]  }
 0xe9b   : > { %3787 = vmatpush1.bf16.msra.mxu0 %v5546_v34  ;;  %3869 = vmatpush1.bf16.msra.mxu1 %v5549_v35  ;;  %v5611_v34 = vld [vmem:[#allocation5 + $0x30c] ss:$16 sps:$4 sm:$0xff]   ;;  %v5606_v35 = vld [vmem:[#allocation5 + $0x300] ss:$16 sps:$4 sm:$0xff]  }
 0xe9c   : > { %3788 = vmatprep.subr.bf16.mxu0 %v5554_v36  ;;  %3870 = vmatprep.subr.bf16.mxu1 %v5557_v37  ;;  %v5609_v36 = vld [vmem:[#allocation5 + $0x308] ss:$16 sps:$4 sm:$0xff]   ;;  %v5614_v37 = vld [vmem:[#allocation5 + $0x324] ss:$16 sps:$4 sm:$0xff]  }
 0xe9f   : > { %3789 = vmatpush1.bf16.msra.mxu0 %v5552_v38  ;;  %3871 = vmatpush1.bf16.msra.mxu1 %v5555_v43  ;;  %v5617_v38 = vld [vmem:[#allocation5 + $0x32c] ss:$16 sps:$4 sm:$0xff]   ;;  %v5612_v43 = vld [vmem:[#allocation5 + $0x320] ss:$16 sps:$4 sm:$0xff]  }
 0xea0   : > { %3799 = vmatprep.subr.bf16.mxu0 %v5560_v24  ;;  %3881 = vmatprep.subr.bf16.mxu1 %v5563_v45  ;;  %v5615_v24 = vld [vmem:[#allocation5 + $0x328] ss:$16 sps:$4 sm:$0xff]   ;;  %v5620_v45 = vld [vmem:[#allocation5 + $0x344] ss:$16 sps:$4 sm:$0xff]  }
 0xf35   : > { %v2912_v19 = vpop.f32.mrb[36].mxu0  ;;  %v6564_v47 = vpop.f32.mrb[36].mxu1 }
 0xf36   : > { %v2913_v48 = vadd.f32 %v2912_v19, %v2838_v52  ;;  %v2914_v49 = vpop.f32.mrb[37].mxu0  ;;  %v2955_v51 = vpop.f32.mrb[37].mxu1  ;;  %v5623_v52 = vld [vmem:[#allocation5 + $0x34c] ss:$16 sps:$4 sm:$0xff]   ;;  %v5626_v19 = vld [vmem:[#allocation5 + $0x364] ss:$16 sps:$4 sm:$0xff]  }
 0xf37   : > { %v2915_v53 = vadd.f32 %v2914_v49, %v2842_v32  ;;  %v2956_v54 = vadd.f32 %v2955_v51, %v2850_v46  ;;  %v2916_v55 = vpop.f32.mrb[38].mxu0  ;;  %v2957_v56 = vpop.f32.mrb[38].mxu1  ;;  %v5618_v32 = vld [vmem:[#allocation5 + $0x340] ss:$16 sps:$4 sm:$0xff]   ;;  %v5621_v46 = vld [vmem:[#allocation5 + $0x348] ss:$16 sps:$4 sm:$0xff]  }
 0xf38   : > { %v2960_v57 = vmax.f32 %v2913_v48, 0.0  ;;  %v2917_v58 = vpop.f32.mrb[39].mxu0  ;;  %v2958_v13 = vpop.f32.mrb[39].mxu1  ;;  %v5629_v48 = vld [vmem:[#allocation5 + $0x36c] ss:$16 sps:$4 sm:$0xff]  }
 0xf39   : > { %v2961_v2 = vmax.f32 %v2915_v53, 0.0  ;;  %v2963_v5 = vmax.f32 %v2956_v54, 0.0  ;;  %v5624_v49 = vld [vmem:[#allocation5 + $0x360] ss:$16 sps:$4 sm:$0xff]   ;;  %v5627_v51 = vld [vmem:[#allocation5 + $0x368] ss:$16 sps:$4 sm:$0xff]  }
 0xf3a   : > { %v2964_v59 = vpack.c.bf16 %v2960_v57, %v2960_v57  ;;  %v5632_v53 = vld [vmem:[#allocation5 + $0x384] ss:$16 sps:$4 sm:$0xff]   ;;  %v5635_v54 = vld [vmem:[#allocation5 + $0x38c] ss:$16 sps:$4 sm:$0xff]   ;;  %v5630_v55 = vld [vmem:[#allocation5 + $0x380] ss:$16 sps:$4 sm:$0xff]  }
 0xf3b   : > { %v2965_v10 = vpack.c.bf16 %v2961_v2, %v2961_v2  ;;  %v2967_v23 = vpack.c.bf16 %v2963_v5, %v2963_v5  ;;  %v5633_v56 = vld [vmem:[#allocation5 + $0x388] ss:$16 sps:$4 sm:$0xff]   ;;  %v5638_v57 = vld [vmem:[#allocation5 + $0x3a4] ss:$16 sps:$4 sm:$0xff]   ;;  %v5641_v58 = vld [vmem:[#allocation5 + $0x3ac] ss:$16 sps:$4 sm:$0xff]   ;;  %v2846_v5 = vrot.slane %v6556_v50, %v6120_v29 }
 0xf3c   : > { %v5636_v13 = vld [vmem:[#allocation5 + $0x3a0] ss:$16 sps:$4 sm:$0xff]   ;;  %v5639_v2 = vld [vmem:[#allocation5 + $0x3a8] ss:$16 sps:$4 sm:$0xff]  }
 0xf3d   : > { %3790 = vmatprep.mubr.bf16.mxu0 %v2965_v10  ;;  %3872 = vmatprep.mubr.bf16.mxu1 %v2965_v10  ;;  %v5644_v10 = vld [vmem:[#allocation5 + $0x3c4] ss:$16 sps:$4 sm:$0xff]  }
 0xf3e   : > { %3791 = vmatmul.mubr.bf16.vlgmr.msra.gmra.mrb[40].mxu0 %v2964_v59  ;;  %3873 = vmatmul.mubr.bf16.vlgmr.msra.gmra.mrb[40].mxu1 %v2964_v59  ;;  %v5645_v59 = vld [vmem:[#allocation5 + $0x3c8] ss:$16 sps:$4 sm:$0xff]   ;;  %v5654_v50 = vld [vmem:[%s6741_s18 + $0x40] sm:$0xff]  }
 0xf3f   : > { %3800 = vmatpush1.bf16.msra.mxu0 %v5558_v17  ;;  %3882 = vmatpush1.bf16.msra.mxu1 %v5561_v21  ;;  %v5647_v17 = vld [vmem:[#allocation5 + $0x3cc] ss:$16 sps:$4 sm:$0xff]   ;;  %v5642_v21 = vld [vmem:[#allocation5 + $0x3c0] ss:$16 sps:$4 sm:$0xff]  }
 0xf40   : > { %3831 = vmatprep.mubr.bf16.mxu0 %v2967_v23  ;;  %3913 = vmatprep.mubr.bf16.mxu1 %v2967_v23  ;;  %v5653_v23 = vld [vmem:[#allocation5 + $0x3ec] ss:$16 sps:$4 sm:$0xff]  }
 0xf41   : > { %3801 = vmatprep.subr.bf16.mxu0 %v5566_v22  ;;  %3883 = vmatprep.subr.bf16.mxu1 %v5569_v60  ;;  %v2954_v22 = vadd.f32 %v6564_v47, %v2846_v5  ;;  %v5650_v60 = vld [vmem:[#allocation5 + $0x3e4] ss:$16 sps:$4 sm:$0xff]  }
 0xf42   : > { %v5656_v47 = vld [vmem:[%s6741_s18] sm:$0xff]  }
 0xf43   : > { %3802 = vmatpush1.bf16.msra.mxu0 %v5564_v25  ;;  %3884 = vmatpush1.bf16.msra.mxu1 %v5567_v26  ;;  %v5648_v25 = vld [vmem:[#allocation5 + $0x3e0] ss:$16 sps:$4 sm:$0xff]   ;;  %v5651_v26 = vld [vmem:[#allocation5 + $0x3e8] ss:$16 sps:$4 sm:$0xff]  }
 0xf44   : > { %3803 = vmatprep.subr.bf16.mxu0 %v5572_v27  ;;  %3885 = vmatprep.subr.bf16.mxu1 %v5575_v28  ;;  %v2962_v27 = vmax.f32 %v2954_v22, 0.0  ;;  %v5655_v28 = vld [vmem:[%s6741_s18 + $0xc0] sm:$0xff]  }
 0xf47   : > { %3804 = vmatpush1.bf16.msra.mxu0 %v5570_v30  ;;  %3886 = vmatpush1.bf16.msra.mxu1 %v5573_v11  ;;  %v5657_v30 = vld [vmem:[%s6741_s18 + $0x80] sm:$0xff]   ;;  %v2966_v11 = vpack.c.bf16 %v2962_v27, %v2962_v27 }
 0xf48   : > { %3805 = vmatprep.subr.bf16.mxu0 %v5578_v39  ;;  %3887 = vmatprep.subr.bf16.mxu1 %v5581_v61  ;;  %v5658_v39 = vld [vmem:[%s6741_s18 + $0x48] sm:$0xff]  }
 0xf49   : > { %v5659_v61 = vld [vmem:[%s6741_s18 + $0xc8] sm:$0xff]  }
 0xf4b   : > { %3806 = vmatpush1.bf16.msra.mxu0 %v5576_v40  ;;  %3888 = vmatpush1.bf16.msra.mxu1 %v5579_v62  ;;  %v5660_v40 = vld [vmem:[%s6741_s18 + $0x8] sm:$0xff]  }
 0xf4c   : > { %3807 = vmatprep.subr.bf16.mxu0 %v5584_v44  ;;  %3889 = vmatprep.subr.bf16.mxu1 %v5587_v41  ;;  %v5661_v62 = vld [vmem:[%s6741_s18 + $0x88] sm:$0xff]   ;;  %v5662_v44 = vld [vmem:[%s6741_s18 + $0x50] sm:$0xff]  }
 0xf4d   : > { %v5663_v41 = vld [vmem:[%s6741_s18 + $0xd0] sm:$0xff]  }
 0xf4f   : > { %3808 = vmatpush1.bf16.msra.mxu0 %v5582_v63  ;;  %3890 = vmatpush1.bf16.msra.mxu1 %v5585_v31  ;;  %v5664_v63 = vld [vmem:[%s6741_s18 + $0x10] sm:$0xff]  }
 0xf50   : > { %3809 = vmatprep.subr.bf16.mxu0 %v5590_v1  ;;  %3891 = vmatprep.subr.bf16.mxu1 %v5593_v42  ;;  %v5665_v31 = vld [vmem:[%s6741_s18 + $0x90] sm:$0xff]   ;;  %v5666_v1 = vld [vmem:[%s6741_s18 + $0x58] sm:$0xff]  }
 0xf51   : > { %v5667_v42 = vld [vmem:[%s6741_s18 + $0xd8] sm:$0xff]  }
 0xf53   : > { %3810 = vmatpush1.bf16.msra.mxu0 %v5588_v3  ;;  %3892 = vmatpush1.bf16.msra.mxu1 %v5591_v0  ;;  %v5668_v3 = vld [vmem:[%s6741_s18 + $0x18] sm:$0xff]  }
 0xf54   : > { %3811 = vmatprep.subr.bf16.mxu0 %v5596_v4  ;;  %3893 = vmatprep.subr.bf16.mxu1 %v5599_v6  ;;  %v5669_v0 = vld [vmem:[%s6741_s18 + $0x98] sm:$0xff]   ;;  %v5670_v4 = vld [vmem:[%s6741_s18 + $0x60] sm:$0xff]  }
 0xf55   : > { %v5671_v6 = vld [vmem:[%s6741_s18 + $0xe0] sm:$0xff]  }
 0xf57   : > { %3812 = vmatpush1.bf16.msra.mxu0 %v5594_v7  ;;  %3894 = vmatpush1.bf16.msra.mxu1 %v5597_v8  ;;  %v5672_v7 = vld [vmem:[%s6741_s18 + $0x20] sm:$0xff]  }
 0xf58   : > { %3813 = vmatprep.subr.bf16.mxu0 %v5602_v9  ;;  %3895 = vmatprep.subr.bf16.mxu1 %v5605_v16  ;;  %v5673_v8 = vld [vmem:[%s6741_s18 + $0xa0] sm:$0xff]   ;;  %v5674_v9 = vld [vmem:[%s6741_s18 + $0x68] sm:$0xff]  }
 0xf59   : > { %v5675_v16 = vld [vmem:[%s6741_s18 + $0xe8] sm:$0xff]  }
 0xf5b   : > { %3814 = vmatpush1.bf16.msra.mxu0 %v5600_v18  ;;  %3896 = vmatpush1.bf16.msra.mxu1 %v5603_v20  ;;  %v5676_v18 = vld [vmem:[%s6741_s18 + $0x28] sm:$0xff]  }
 0xf5c   : > { %3815 = vmatprep.subr.bf16.mxu0 %v5608_v33  ;;  %3897 = vmatprep.subr.bf16.mxu1 %v5611_v34  ;;  %v5677_v20 = vld [vmem:[%s6741_s18 + $0xa8] sm:$0xff]   ;;  %v5678_v33 = vld [vmem:[%s6741_s18 + $0x70] sm:$0xff]  }
 0xf5d   : > { %v5679_v34 = vld [vmem:[%s6741_s18 + $0xf0] sm:$0xff]  }
 0xf5f   : > { %3816 = vmatpush1.bf16.msra.mxu0 %v5606_v35  ;;  %3898 = vmatpush1.bf16.msra.mxu1 %v5609_v36  ;;  %v5680_v35 = vld [vmem:[%s6741_s18 + $0x30] sm:$0xff]  }
 0xf60   : > { %3817 = vmatprep.subr.bf16.mxu0 %v5614_v37  ;;  %3899 = vmatprep.subr.bf16.mxu1 %v5617_v38  ;;  %v5681_v36 = vld [vmem:[%s6741_s18 + $0xb0] sm:$0xff]   ;;  %v5682_v37 = vld [vmem:[%s6741_s18 + $0x78] sm:$0xff]  }
 0xf61   : > { %v5683_v38 = vld [vmem:[%s6741_s18 + $0xf8] sm:$0xff]  }
 0xf63   : > { %3818 = vmatpush1.bf16.msra.mxu0 %v5612_v43  ;;  %3900 = vmatpush1.bf16.msra.mxu1 %v5615_v24  ;;  %v5684_v43 = vld [vmem:[%s6741_s18 + $0x38] sm:$0xff]  }
 0xf64   : > { %3819 = vmatprep.subr.bf16.mxu0 %v5620_v45  ;;  %3901 = vmatprep.subr.bf16.mxu1 %v5623_v52  ;;  %v5685_v24 = vld [vmem:[%s6741_s18 + $0xb8] sm:$0xff]   ;;  %v3096_v45 = vld [vmem:[%s6740_s17] sm:$0xf] }
 0xf65   : > { %v3101_v52 = vrot.slane %v3096_v45, %v6098_v12 }
 0xf67   : > { %3820 = vmatpush1.bf16.msra.mxu0 %v5618_v32  ;;  %3902 = vmatpush1.bf16.msra.mxu1 %v5621_v46  ;;  %v3109_v32 = vrot.slane %v3096_v45, %v6120_v29  ;;  %v3105_v46 = vrot.slane %v3096_v45, %v6106_v14 }
 0xf68   : > { %3821 = vmatprep.subr.bf16.mxu0 %v5626_v19  ;;  %3903 = vmatprep.subr.bf16.mxu1 %v5629_v48  ;;  %v3113_v19 = vrot.slane %v3096_v45, %v6109_v15 }
 0xf6b   : > { %3822 = vmatpush1.bf16.msra.mxu0 %v5624_v49  ;;  %3904 = vmatpush1.bf16.msra.mxu1 %v5627_v51 }
 0xf6c   : > { %3823 = vmatprep.subr.bf16.mxu0 %v5632_v53  ;;  %3905 = vmatprep.subr.bf16.mxu1 %v5635_v54 }
 0xf6f   : > { %3824 = vmatpush1.bf16.msra.mxu0 %v5630_v55  ;;  %3906 = vmatpush1.bf16.msra.mxu1 %v5633_v56 }
 0xf70   : > { %3825 = vmatprep.subr.bf16.mxu0 %v5638_v57  ;;  %3907 = vmatprep.subr.bf16.mxu1 %v5641_v58 }
 0xf73   : > { %3826 = vmatpush1.bf16.msra.mxu0 %v5636_v13  ;;  %3908 = vmatpush1.bf16.msra.mxu1 %v5639_v2 }
 0xf74   : > { %3827 = vmatprep.subr.bf16.mxu0 %v5644_v10  ;;  %3909 = vmatprep.subr.bf16.mxu1 %v5647_v17 }
 0xf77   : > { %3828 = vmatpush1.bf16.msra.mxu0 %v5642_v21  ;;  %3910 = vmatpush1.bf16.msra.mxu1 %v5645_v59 }
 0xf78   : > { %3829 = vmatprep.subr.bf16.mxu0 %v5650_v60  ;;  %3911 = vmatprep.subr.bf16.mxu1 %v5653_v23  ;;  %v4729_v23 = vld [vmem:[%s6789_s27] ss:$0 sm:$0xff]  ;;  %s5768_s27 = scalar_lea.vmem %s5767_s25, 256 }
 0xf79   : > { %p5770_p7 = scmp.lt.s32.totalorder %s5768_s27, %s5762_s21 }
 0xf7b   : > { %3830 = vmatpush1.bf16.msra.mxu0 %v5648_v25  ;;  %3912 = vmatpush1.bf16.msra.mxu1 %v5651_v26  ;;  %p5771_p8 = por %p5770_p7, %p5769_p4 }
 0xf7c   : > { %4890 = vmatprep.subr.bf16.mxu0 %v5654_v50  ;;  %4912 = vmatprep.subr.bf16.mxu1 %v5655_v28 }
 0xf7d   : > { %p5772_p11 = pnand %p5771_p8, %p5765_p3 }
 0xf7e   : > { %3832 = vmatmul.mubr.bf16.vlgmr.msra.gmra.mrb[40].mxu0 %v2966_v11  ;;  %3914 = vmatmul.mubr.bf16.vlgmr.msra.gmra.mrb[40].mxu1 %v2966_v11 }
 0xf7f   : > { %4891 = vmatpush3.bf16.msra.mxu0 %v5656_v47  ;;  %4913 = vmatpush3.bf16.msra.mxu1 %v5657_v30 }
 0xf80   : > { %4892 = vmatprep.subr.bf16.mxu0 %v5658_v39  ;;  %4914 = vmatprep.subr.bf16.mxu1 %v5659_v61  ;;  %v4275_v39 = vpop.permute.xlu1 %4274 }
 0xf83   : > { %4893 = vmatpush3.bf16.msra.mxu0 %v5660_v40  ;;  %4915 = vmatpush3.bf16.msra.mxu1 %v5661_v62 }
 0xf84   : > { %4894 = vmatprep.subr.bf16.mxu0 %v5662_v44  ;;  %4916 = vmatprep.subr.bf16.mxu1 %v5663_v41  ;;  %v4279_v62 = vpop.permute.xlu1 %4278 }
 0xf87   : > { %4895 = vmatpush3.bf16.msra.mxu0 %v5664_v63  ;;  %4917 = vmatpush3.bf16.msra.mxu1 %v5665_v31 }
 0xf88   : > { %4896 = vmatprep.subr.bf16.mxu0 %v5666_v1  ;;  %4918 = vmatprep.subr.bf16.mxu1 %v5667_v42 }
 0xf8b   : > { %4897 = vmatpush3.bf16.msra.mxu0 %v5668_v3  ;;  %4919 = vmatpush3.bf16.msra.mxu1 %v5669_v0 }
 0xf8c   : > { %4898 = vmatprep.subr.bf16.mxu0 %v5670_v4  ;;  %4920 = vmatprep.subr.bf16.mxu1 %v5671_v6 }
 0xf8f   : > { %4899 = vmatpush3.bf16.msra.mxu0 %v5672_v7  ;;  %4921 = vmatpush3.bf16.msra.mxu1 %v5673_v8 }
 0xf90   : > { %4900 = vmatprep.subr.bf16.mxu0 %v5674_v9  ;;  %4922 = vmatprep.subr.bf16.mxu1 %v5675_v16 }
 0xf93   : > { %4901 = vmatpush3.bf16.msra.mxu0 %v5676_v18  ;;  %4923 = vmatpush3.bf16.msra.mxu1 %v5677_v20 }
 0xf94   : > { %4902 = vmatprep.subr.bf16.mxu0 %v5678_v33  ;;  %4924 = vmatprep.subr.bf16.mxu1 %v5679_v34 }
 0xf97   : > { %4903 = vmatpush3.bf16.msra.mxu0 %v5680_v35  ;;  %4925 = vmatpush3.bf16.msra.mxu1 %v5681_v36 }
 0xf98   : > { %4904 = vmatprep.subr.bf16.mxu0 %v5682_v37  ;;  %4926 = vmatprep.subr.bf16.mxu1 %v5683_v38 }
 0xf9b   : > { %4905 = vmatpush3.bf16.msra.mxu0 %v5684_v43  ;;  %4927 = vmatpush3.bf16.msra.mxu1 %v5685_v24 }
0x1051   : > { %v3833_v48 = vpop.f32.mrb[40].mxu0  ;;  %v3915_v49 = vpop.f32.mrb[40].mxu1 }
0x1052   : > { %v5122_v51 = vadd.f32 %v3833_v48, %v3101_v52  ;;  %v5124_v53 = vadd.f32 %v3915_v49, %v3109_v32  ;;  %v3835_v54 = vpop.f32.mrb[41].mxu0  ;;  %v3917_v55 = vpop.f32.mrb[41].mxu1 }
0x1053   : > { %v5123_v56 = vadd.f32 %v3835_v54, %v3105_v46  ;;  %v5125_v57 = vadd.f32 %v3917_v55, %v3113_v19  ;;  %v3837_v58 = vpop.f32.mrb[42].mxu0  ;;  %v3919_v13 = vpop.f32.mrb[42].mxu1 }
0x1054   : > { %v3922_v2 = vmax.f32 %v5122_v51, 0.0  ;;  %v3924_v5 = vmax.f32 %v5124_v53, 0.0  ;;  %v3838_v12 = vpop.f32.mrb[43].mxu0  ;;  %v3920_v10 = vpop.f32.mrb[43].mxu1 }
0x1055   : > { %v3923_v29 = vmax.f32 %v5123_v56, 0.0  ;;  %v3925_v17 = vmax.f32 %v5125_v57, 0.0 }
0x1056   : > { %v3926_v15 = vpack.c.bf16 %v3922_v2, %v3922_v2  ;;  %v3928_v59 = vpack.c.bf16 %v3924_v5, %v3924_v5 }
0x1057   : > { %v3927_v14 = vpack.c.bf16 %v3923_v29, %v3923_v29  ;;  %v3929_v21 = vpack.c.bf16 %v3925_v17, %v3925_v17 }
0x1059   : > { %4225 = vmatprep.mubr.bf16.mxu0 %v3927_v14  ;;  %4265 = vmatprep.mubr.bf16.mxu1 %v3929_v21 }
0x105a   : > { %4226 = vmatmul.mubr.bf16.vlgmr.msra.gmra.mrb[44].mxu0 %v3926_v15  ;;  %4266 = vmatmul.mubr.bf16.vlgmr.msra.gmra.mrb[44].mxu1 %v3928_v59 }
0x112d   : > { %v4906_v22 = vpop.f32.mrb[44].mxu0  ;;  %v4928_v60 = vpop.f32.mrb[44].mxu1 }
0x112e   : > { %v4907_v25 = vpop.f32.mrb[45].mxu0  ;;  %v4929_v26 = vpop.f32.mrb[45].mxu1 }
0x112f   : > { %v4908_v27 = vadd.f32 %v4907_v25, %v4906_v22  ;;  %v4930_v50 = vadd.f32 %v4929_v26, %v4928_v60  ;;  %v4909_v28 = vpop.f32.mrb[46].mxu0  ;;  %v4931_v47 = vpop.f32.mrb[46].mxu1 }
0x1130   : > { %v4910_v30 = vpop.f32.mrb[47].mxu0  ;;  %v4932_v11 = vpop.f32.mrb[47].mxu1 }
0x1131   : > { %v4228_v61 = vadd.f32 %v4908_v27, %v4729_v23 }
0x1133   : > { %v4268_v40 = vadd.f32 %v4930_v50, %v4228_v61 }
0x1135   : > { %v4281_v44 = vsel %vm721_vm0, %v4268_v40, %v4275_v39 }
0x1136   : > { %v4283_v41 = vsel %vm4282_vm4, %v4281_v44, %v4279_v62 }
0x1137   : > { %4285 = vst.msk [vmem:[%s663_s30] sm:$0xff] %vm4284_vm5, %v4283_v41 }
0x1138   : > { %5775 = shalt.err (!%p5772_p11)
}
0x1139   : > { %s5776_s26 = scalar_lea.hbm %s6681_s0, 128  ;;  %s5780_s23 = scalar_lea.hbm %s6792_s29, 512 }
0x113a   : > { %p5777_p13 = scmp.ne.s32.totalorder %s6681_s0, %s5776_s26  ;;  %p5781_p6 = scmp.lt.u32.totalorder %s6681_s0, %s6792_s29 }
0x113b   : > { %p5782_p9 = scmp.lt.u32.totalorder %s5780_s23, %s5776_s26  ;;  %p5784_p12 = scmp.lt.u32.totalorder %s5776_s26, %s6681_s0 }
0x113c   : > { %p5778_p5 = pnand %p5777_p13, %p6793_p1 }
0x113d   : > { %p5783_p10 = por %p5782_p9, %p5781_p6 }
0x113e   : > { %p5779_p0 = pneg %p5778_p5 }
0x113f   : > { %p5785_p2 = por %p5784_p12, %p5783_p10 }
0x1141   : > { %p5786_p3 = pnand %p5785_p2, %p5779_p0 }
0x1143   : > { %5789 = shalt.err (!%p5786_p3)
}
0x1144   : > { %5150 = dma.vmem_to_hbm [thread:$0]  (%p6793_p1), %s6683_s1, 128, %s6681_s0, %s4287_s2  }
0x1145 PF: > { %s6794_s21 = sld [smem:[#allocation14_spill]]  ;;  %s6795_s19 = sld [smem:[#allocation11_spill]] }
0x1146   : > { %s6796_s25 = sld [smem:[#allocation18_spill]] }
0x114b   : > { %p5167_p4 = scmp.ge.s32.totalorder %s6794_s21, 2  ;;  %s4312_s27 = sand.u32 1, %s6795_s19  }
0x114c   : > { %p6797_p7 = scmp.ne.s32.totalorder %s6796_s25, 0  ;;  %s4313_s4 = scalar_lea.sflag [#allocation4], %s4312_s27 }
0x114e   : > { %p5160_p8 = pnand %p5167_p4, %p6797_p7 }
0x1150   : > { %5815 = dma.done.wait (!%p5160_p8), %s4313_s4, 128  }
0x1151   : > { %5817 = vsyncadd (!%p5160_p8), %s4313_s4, 4294967168  ;;  %s6798_s24 = sld [smem:[#allocation15_spill]]  ;;  %s6799_s1 = sld [smem:[#allocation12_spill]] }
0x1152   : > { %s6800_s22 = sld [smem:[#allocation13_spill]]  ;;  %s6801_s23 = sld [smem:[#allocation16_spill]] }
0x1157   : > { %p32_p11 = scmp.ge.s32.totalorder %s6798_s24, 6  }
0x1159   :  { %34 = sbr.rel (!%p32_p11) target bundleno = 13 (0xd), region = 147 }
0x1160   :  { %4318 = vsyncpa [#allocation3], 1 }
0x1161   :  { %4320 = vsyncpa [#allocation3 + $0x1], 1 }
0x1162   :  { %4321 = vsyncpa [#allocation6], 1 }
0x1163   :  { %4322 = vsyncpa [#allocation4], 1 }
0x1164   :  { %4324 = vsyncpa [#allocation4 + $0x1], 1 }

</bundles_post_ra>
